<compile_context>
chip_gen: v6e
topology: v6e:2x2x1
jax: 0.10.0
libtpu: 0.0.40
codegen_flags: <defaults>
</compile_context>

<pallas_src>
import functools

import jax
import jax.numpy as jnp
from jax.experimental import pallas as pl
from jax.experimental.pallas import tpu as pltpu

IN_FEATURES = 784
OUT_FEATURES = 1024


def _select_tile_n():
    """Pick the output-feature tile per TPU generation.

    v7x has 2 TensorCores per chip -> 2 parallel N-tiles (each TC DMAs half
    the weight).  Single-TC chips (v5e/v6e) prefer one full-width tile: there
    is nothing to pipeline against, so extra grid steps only add overhead.
    """
    try:
        kind = jax.devices()[0].device_kind.lower()
    except Exception:  # pragma: no cover - defensive, e.g. no devices yet
        kind = ""
    if "v7" in kind or "7x" in kind:
        return 512
    return 1024


def _uniform_bits(seed_u32, tile_col0_u32, shape):
    """Stateless per-element uint32 hash (lowbias32-style finalizer).

    Stream depends only on (seed, absolute row, absolute column), so it is
    independent of tiling / execution order -> grid axis can be 'parallel'.
    """
    rows = jax.lax.broadcasted_iota(jnp.int32, shape, 0).astype(jnp.uint32)
    cols = jax.lax.broadcasted_iota(jnp.int32, shape, 1).astype(jnp.uint32)
    x = rows * jnp.uint32(OUT_FEATURES) + cols + tile_col0_u32
    x = x + seed_u32 * jnp.uint32(0x9E3779B9)
    x = x ^ (x >> 16)
    x = x * jnp.uint32(0x21F0AAAD)
    x = x ^ (x >> 15)
    x = x * jnp.uint32(0x735A2D97)
    x = x ^ (x >> 15)
    return x


def _client_model_kernel(seed_ref, x_ref, w_ref, b_ref, o_ref, *,
                         apply_dropout, tile_n):
    """One grid step computes a [B, tile_n] slab of the output.

    x_ref: [B, 784]        float32 (full batch, full K)
    w_ref: [784, tile_n]   bfloat16 (weight pre-transposed to [K, N] layout)
    b_ref: [1, tile_n]     float32
    o_ref: [B, tile_n]     float32
    """
    # Linear: x @ W_kn + b  (bf16 MXU matmul, f32 accumulate)
    y = jnp.dot(x_ref[...].astype(jnp.bfloat16), w_ref[...],
                preferred_element_type=jnp.float32)
    y = y + b_ref[...]

    # ReLU
    y = jnp.maximum(y, 0.0)

    if apply_dropout:
        # Dropout(p=0.5), training mode: keep w.p. 0.5, scale kept values by 2.
        j = pl.program_id(0)
        seed_u32 = seed_ref[0].astype(jnp.uint32)
        col0_u32 = (j * tile_n).astype(jnp.uint32)
        bits = _uniform_bits(seed_u32, col0_u32, y.shape)
        keep = (bits >> 31) == jnp.uint32(0)  # top bit -> Bernoulli(0.5)
        y = jnp.where(keep, y * 2.0, 0.0)

    o_ref[...] = y.astype(o_ref.dtype)


def prepare_params(w, b):
    """One-time conversion from PyTorch nn.Linear layout (hoisted work).

    w: [1024, 784] f32 -> w_kn [784, 1024] bf16 (halves HBM weight traffic)
    b: [1024]      f32 -> [1, 1024] f32
    """
    return jnp.transpose(w).astype(jnp.bfloat16), b.reshape(1, OUT_FEATURES)


def client_model_forward(x, w_kn, b2d, seed, *, training=True):
    """Forward pass of ClientModel.

    x:    [B, 784] float32
    w_kn: [784, 1024] bfloat16 (pre-transposed/cast once via prepare_params)
    b2d:  [1, 1024] float32
    seed: int / int32 scalar for the dropout hash (fresh seed per step!)
    """
    B, K = x.shape
    Kw, N = w_kn.shape
    assert K == IN_FEATURES and Kw == IN_FEATURES and N == OUT_FEATURES
    # B is a full-extent block; multiples of 8 avoid sublane padding.

    tile_n = _select_tile_n()
    grid = (N // tile_n,)
    seed_arr = jnp.array([seed], dtype=jnp.int32)
    kernel = functools.partial(_client_model_kernel,
                               apply_dropout=training, tile_n=tile_n)

    cost = pl.CostEstimate(
        flops=2 * B * K * N,
        transcendentals=0,
        bytes_accessed=K * N * 2 + B * K * 4 + N * 4 + B * N * 4,
    )

    return pl.pallas_call(
        kernel,
        out_shape=jax.ShapeDtypeStruct((B, N), x.dtype),
        grid_spec=pltpu.PrefetchScalarGridSpec(
            num_scalar_prefetch=1,
            grid=grid,
            in_specs=[
                # full x every step (B and K are full-extent blocks)
                pl.BlockSpec((B, K), lambda j, seed: (0, 0)),
                # K x tile_n slab of the [K, N] bf16 weight
                pl.BlockSpec((K, tile_n), lambda j, seed: (0, j)),
                # matching bias slab
                pl.BlockSpec((1, tile_n), lambda j, seed: (0, j)),
            ],
            out_specs=pl.BlockSpec((B, tile_n), lambda j, seed: (0, j)),
        ),
        compiler_params=pltpu.CompilerParams(
            # stateless hash -> tiles are order independent; on v7x the two
            # N-tiles shard across the two TensorCores.
            dimension_semantics=("parallel",),
        ),
        cost_estimate=cost,
    )(seed_arr, x, w_kn, b2d)


if __name__ == "__main__":
    key = jax.random.PRNGKey(0)
    kx, kw, kb = jax.random.split(key, 3)

    B = 8
    # deterministic synthetic parameters (nn.Linear(784, 1024) shapes)
    bound = 1.0 / (IN_FEATURES ** 0.5)
    w = jax.random.uniform(kw, (OUT_FEATURES, IN_FEATURES),
                           minval=-bound, maxval=bound, dtype=jnp.float32)
    b = jax.random.uniform(kb, (OUT_FEATURES,),
                           minval=-bound, maxval=bound, dtype=jnp.float32)
    x = jax.random.normal(kx, (B, IN_FEATURES), dtype=jnp.float32)

    # one-time layout prep (transpose + bf16 cast hoisted out of per-call path)
    w_kn, b2d = prepare_params(w, b)

    # training-mode forward (Linear -> ReLU -> Dropout(0.5))
    out = client_model_forward(x, w_kn, b2d, seed=0, training=True)
    out = jax.block_until_ready(out)
    assert out.shape == (B, OUT_FEATURES)

    # eval-mode forward checked against pure-JAX f32 reference
    # (loose tolerance: weights are stored/consumed in bf16)
    out_eval = jax.block_until_ready(
        client_model_forward(x, w_kn, b2d, seed=0, training=False))
    ref_eval = jnp.maximum(x @ w.T + b, 0.0)
    assert jnp.allclose(out_eval, ref_eval, atol=2e-2, rtol=2e-2)

    # dropout sanity: each element is either 0 or exactly 2x the kernel's own
    # eval output (bit-consistent numerics), and the keep rate over strictly
    # positive activations is roughly 1/2.
    structure_ok = (out == 0.0) | jnp.isclose(out, 2.0 * out_eval,
                                              atol=1e-5, rtol=1e-5)
    assert bool(jnp.all(structure_ok))
    pos = out_eval > 1e-4
    keep_rate = jnp.sum((out > 0.0) & pos) / jnp.maximum(jnp.sum(pos), 1)
    assert 0.3 < float(keep_rate) < 0.7

    print("KERNEL_OK")
</pallas_src>

<mosaic_0001>
module attributes {stable_mosaic.version = 11 : i64} {
  func.func @_client_model_kernel(%arg0: i32, %arg1: memref<1xi32, #tpu.memory_space<smem>>, %arg2: memref<8x784xf32, #tpu.memory_space<vmem>>, %arg3: memref<784x1024xbf16, #tpu.memory_space<vmem>>, %arg4: memref<1x1024xf32, #tpu.memory_space<vmem>>, %arg5: memref<8x1024xf32, #tpu.memory_space<vmem>>) attributes {dimension_semantics = [#tpu.dimension_semantics<parallel>], iteration_bounds = array<i64: 1>, scalar_prefetch = 1 : i64, scratch_operands = 0 : i64, tpu.core_type = #tpu.core_type<tc>, window_params = [{pipeline_mode = #tpu.pipeline_mode<synchronous>, transform_indices = @transform_0, window_bounds = array<i64: 8, 784>}, {transform_indices = @transform_1, window_bounds = array<i64: 784, 1024>}, {transform_indices = @transform_2, window_bounds = array<i64: 1, 1024>}, {transform_indices = @transform_3, window_bounds = array<i64: 8, 1024>}]} {
    %c0 = arith.constant 0 : index
    %c0_0 = arith.constant 0 : index
    %0 = vector.load %arg2[%c0, %c0_0] : memref<8x784xf32, #tpu.memory_space<vmem>>, vector<8x784xf32>
    %1 = arith.truncf %0 : vector<8x784xf32> to vector<8x784xbf16>
    %c0_1 = arith.constant 0 : index
    %c0_2 = arith.constant 0 : index
    %2 = vector.load %arg3[%c0_1, %c0_2] : memref<784x1024xbf16, #tpu.memory_space<vmem>>, vector<784x1024xbf16>
    %cst = arith.constant dense<0.000000e+00> : vector<8x1024xf32>
    %3 = tpu.matmul %1, %2, %cst {dimension_numbers = #tpu.dot_dimension_numbers<[1], [0], [0], [1], [0, 0, 1, 1], [], []>} : vector<8x784xbf16>, vector<784x1024xbf16>, vector<8x1024xf32> -> vector<8x1024xf32>
    %c0_3 = arith.constant 0 : index
    %c0_4 = arith.constant 0 : index
    %4 = vector.load %arg4[%c0_3, %c0_4] : memref<1x1024xf32, #tpu.memory_space<vmem>>, vector<1x1024xf32>
    %5 = vector.broadcast %4 : vector<1x1024xf32> to vector<8x1024xf32>
    %6 = arith.addf %3, %5 : vector<8x1024xf32>
    %cst_5 = arith.constant 0.000000e+00 : f32
    %7 = vector.broadcast %cst_5 : f32 to vector<8x1024xf32>
    %8 = arith.maximumf %6, %7 : vector<8x1024xf32>
    %c0_6 = arith.constant 0 : index
    %9 = memref.load %arg1[%c0_6] : memref<1xi32, #tpu.memory_space<smem>>
    %c1024_i32 = arith.constant 1024 : i32
    %10 = arith.muli %arg0, %c1024_i32 : i32
    %11 = tpu.iota {dimensions = array<i32: 0>} : vector<8x1024xi32>
    %12 = tpu.iota {dimensions = array<i32: 1>} : vector<8x1024xi32>
    %c1024_i32_7 = arith.constant 1024 : i32
    %13 = vector.broadcast %c1024_i32_7 : i32 to vector<8x1024xi32>
    %14 = arith.muli %11, %13 : vector<8x1024xi32>
    %15 = arith.addi %14, %12 : vector<8x1024xi32>
    %16 = vector.broadcast %10 : i32 to vector<8x1024xi32>
    %17 = arith.addi %15, %16 : vector<8x1024xi32>
    %c-1640531527_i32 = arith.constant -1640531527 : i32
    %18 = arith.muli %9, %c-1640531527_i32 : i32
    %19 = vector.broadcast %18 : i32 to vector<8x1024xi32>
    %20 = arith.addi %17, %19 : vector<8x1024xi32>
    %c16_i32 = arith.constant 16 : i32
    %21 = vector.broadcast %c16_i32 : i32 to vector<8x1024xi32>
    %22 = arith.shrui %20, %21 : vector<8x1024xi32>
    %23 = arith.xori %20, %22 : vector<8x1024xi32>
    %c569420461_i32 = arith.constant 569420461 : i32
    %24 = vector.broadcast %c569420461_i32 : i32 to vector<8x1024xi32>
    %25 = arith.muli %23, %24 : vector<8x1024xi32>
    %c15_i32 = arith.constant 15 : i32
    %26 = vector.broadcast %c15_i32 : i32 to vector<8x1024xi32>
    %27 = arith.shrui %25, %26 : vector<8x1024xi32>
    %28 = arith.xori %25, %27 : vector<8x1024xi32>
    %c1935289751_i32 = arith.constant 1935289751 : i32
    %29 = vector.broadcast %c1935289751_i32 : i32 to vector<8x1024xi32>
    %30 = arith.muli %28, %29 : vector<8x1024xi32>
    %c15_i32_8 = arith.constant 15 : i32
    %31 = vector.broadcast %c15_i32_8 : i32 to vector<8x1024xi32>
    %32 = arith.shrui %30, %31 : vector<8x1024xi32>
    %33 = arith.xori %30, %32 : vector<8x1024xi32>
    %c31_i32 = arith.constant 31 : i32
    %34 = vector.broadcast %c31_i32 : i32 to vector<8x1024xi32>
    %35 = arith.shrui %33, %34 : vector<8x1024xi32>
    %c0_i32 = arith.constant 0 : i32
    %36 = vector.broadcast %c0_i32 : i32 to vector<8x1024xi32>
    %37 = arith.cmpi eq, %35, %36 : vector<8x1024xi32>
    %cst_9 = arith.constant 2.000000e+00 : f32
    %38 = vector.broadcast %cst_9 : f32 to vector<8x1024xf32>
    %39 = arith.mulf %8, %38 : vector<8x1024xf32>
    %cst_10 = arith.constant 0.000000e+00 : f32
    %40 = vector.broadcast %cst_10 : f32 to vector<8x1024xf32>
    %41 = arith.select %37, %39, %40 : vector<8x1024xi1>, vector<8x1024xf32>
    %c0_11 = arith.constant 0 : index
    %c0_12 = arith.constant 0 : index
    %42 = vector.load %arg5[%c0_11, %c0_12] : memref<8x1024xf32, #tpu.memory_space<vmem>>, vector<8x1024xf32>
    tpu.vector_store %arg5[%c0_11, %c0_12], %41 {strides = array<i32>} : memref<8x1024xf32, #tpu.memory_space<vmem>>, vector<8x1024xf32>,
    return
  }
  func.func @transform_0(%arg0: i32, %arg1: memref<1xi32, #tpu.memory_space<smem>>) -> (i32, i32) {
    %c0_i32 = arith.constant 0 : i32
    %c0_i32_0 = arith.constant 0 : i32
    %c0_i32_1 = arith.constant 0 : i32
    return %c0_i32, %c0_i32_0 : i32, i32
  }
  func.func @transform_1(%arg0: i32, %arg1: memref<1xi32, #tpu.memory_space<smem>>) -> (i32, i32) {
    %c0_i32 = arith.constant 0 : i32
    %c0_i32_0 = arith.constant 0 : i32
    return %c0_i32, %arg0 : i32, i32
  }
  func.func @transform_2(%arg0: i32, %arg1: memref<1xi32, #tpu.memory_space<smem>>) -> (i32, i32) {
    %c0_i32 = arith.constant 0 : i32
    %c0_i32_0 = arith.constant 0 : i32
    return %c0_i32, %arg0 : i32, i32
  }
  func.func @transform_3(%arg0: i32, %arg1: memref<1xi32, #tpu.memory_space<smem>>) -> (i32, i32) {
    %c0_i32 = arith.constant 0 : i32
    %c0_i32_0 = arith.constant 0 : i32
    return %c0_i32, %arg0 : i32, i32
  }
}

</mosaic_0001>

<bundles_post_ra>
// kernel: tpu_custom_call.1
= control target key start
LH: loop header
LB: loop body
LE: loop exit
PB: predicated region body
PF: predicated region fallthrough
CT: control target
= control target key end

     0   :  { %10 = vsyncpa [#allocation5], 0  ;;  %s3965_s0 = inlined_call_operand.<no memory space> [shape: s32[1], index: 0, kind: input, shape index: {}]   ;;  %s3966_s1 = inlined_call_operand.hbm [shape: f32[8,784], index: 1, kind: input, shape index: {}]   ;;  %s3967_s2 = inlined_call_operand.hbm [shape: bf16[784,1024], index: 2, kind: input, shape index: {}]   ;;  %s3968_s3 = inlined_call_operand.hbm [shape: f32[1,1024], index: 3, kind: input, shape index: {}]   ;;  %s3969_s4 = inlined_call_operand.hbm [shape: f32[8,1024], index: 4, kind: output, shape index: {}]  }
   0x1   :  { %11 = vsyncpa [#allocation8], 0 }
   0x2   :  { %12 = vsyncpa [#allocation6], 0  ;;  %s3781_s15 = smov [#allocation7]  }
   0x3   :  { %s28_s16 = sshll.u32 %s3781_s15, 4  ;;  %s29_s16 = int_to_ptr.vmem [resolvable:$true] %s28_s16 }
   0x4   :  { %s3703_s17 = scalar_lea.vmem %s29_s16, 50176  ;;  %p3708_p1 = scmp.lt.s32.totalorder %s29_s16, %s29_s16 }
   0x5   :  { %p3704_p0 = scmp.ne.s32.totalorder %s29_s16, %s3703_s17  ;;  %p3709_p2 = scmp.lt.s32.totalorder %s3703_s17, %s3703_s17 }
   0x7   :  { %p3710_p3 = por %p3709_p2, %p3708_p1 }
   0x9   :  { %p3711_p4 = pnand %p3710_p3, %p3704_p0 }
   0xb   :  { %3714 = shalt.err (!%p3711_p4)
}
   0xc   :  { %s3782_s18 = smov 512   ;;  %s3783_s19 = smov 32  }
   0xd   :  { %34 = dma.hbm_to_vmem [thread:$0]  %s3967_s2, 50176, %s29_s16, [#allocation8], %s3782_s18, %s3782_s18, %s3783_s19  }
   0xe   :  { %s3784_s22 = smov [#allocation4]   ;;  %s3785_s24 = smov [#allocation9]  }
   0xf   :  { %s19_s23 = sshll.u32 %s3784_s22, 4  ;;  %s41_s25 = sshll.u32 %s3785_s24, 4  ;;  %s20_s23 = int_to_ptr.vmem [resolvable:$true] %s19_s23  ;;  %s42_s25 = int_to_ptr.vmem [resolvable:$true] %s41_s25 }
  0x10   :  { %s3723_s26 = scalar_lea.vmem %s20_s23, 896  ;;  %p3728_p6 = scmp.lt.s32.totalorder %s20_s23, %s20_s23 }
  0x11   :  { %p3724_p5 = scmp.ne.s32.totalorder %s20_s23, %s3723_s26  ;;  %p3729_p7 = scmp.lt.s32.totalorder %s3723_s26, %s3723_s26 }
  0x13   :  { %p3730_p8 = por %p3729_p7, %p3728_p6 }
  0x15   :  { %p3731_p9 = pnand %p3730_p8, %p3724_p5 }
  0x17   :  { %3734 = shalt.err (!%p3731_p9)
}
  0x18   :  { %22 = dma.hbm_to_vmem [thread:$0]  %s3966_s1, 896, %s20_s23, [#allocation5]  }
  0x19   :  { %s3743_s29 = scalar_lea.vmem %s42_s25, 128  ;;  %p3748_p11 = scmp.lt.s32.totalorder %s42_s25, %s42_s25 }
  0x1a   :  { %p3744_p10 = scmp.ne.s32.totalorder %s42_s25, %s3743_s29  ;;  %p3749_p12 = scmp.lt.s32.totalorder %s3743_s29, %s3743_s29 }
  0x1c   :  { %p3750_p13 = por %p3749_p12, %p3748_p11 }
  0x1e   :  { %p3751_p0 = pnand %p3750_p13, %p3744_p10 }
  0x20   :  { %3754 = shalt.err (!%p3751_p0)
}
  0x21   :  { %44 = dma.hbm_to_vmem [thread:$0]  %s3968_s3, 128, %s42_s25, [#allocation8]  }
  0x22   :  { %3775 = dma.done.wait [#allocation5], 896  }
  0x23   :  { %3776 = vsyncadd [#allocation5], 4294966400 }
  0x24   :  { %3777 = dma.done.wait [#allocation8], 50304  }
  0x25   :  { %3778 = vsyncadd [#allocation8], 4294916992  ;;  %v125_v0 = vld [vmem:[#allocation7 + $0x1c0] sm:$0xff]  ;;  %v56_v53 = vld [vmem:[#allocation4 + $0x8] sm:$0xff]  ;;  %vm2463_vm0 = vcmask 130048  }
  0x26   :  { %v129_v1 = vld [vmem:[#allocation7 + $0x1e0] sm:$0xff]  ;;  %v3822_v58 = vpack.c.bf16 %v56_v53, %v56_v53  ;;  %s3162_s5 = smul.u32 2654435769, %s3965_s0  ;;  %s3787_s0 = smov [#allocation10]  }
  0x27   :  { %v253_v2 = vld [vmem:[#allocation7 + $0x5c0] sm:$0xff]  ;;  %v3349_v3 = vcombine.high %v125_v0, %v129_v1  ;;  %v3348_v5 = vcombine.low %v125_v0, %v129_v1  ;;  %s3282_s6 = sshll.u32 %s3787_s0, 4  ;;  %s3283_s6 = int_to_ptr.vmem [resolvable:$true] %s3282_s6 }
  0x28   :  { %v257_v4 = vld [vmem:[#allocation7 + $0x5e0] sm:$0xff]  ;;  %2499 = vmatprep.mubr.bf16.mxu0 %v3822_v58  ;;  %s3755_s7 = scalar_lea.vmem %s3283_s6, 1024  ;;  %p3760_p2 = scmp.lt.s32.totalorder %s3283_s6, %s3283_s6 }
  0x29   :  { %v117_v6 = vld [vmem:[#allocation7 + $0x180] sm:$0xff]  ;;  %v3477_v8 = vcombine.high %v253_v2, %v257_v4  ;;  %v3476_v9 = vcombine.low %v253_v2, %v257_v4  ;;  %2467 = vmatprep.subr.bf16.mxu0 %v3349_v3  ;;  %p3756_p1 = scmp.ne.s32.totalorder %s3283_s6, %s3755_s7  ;;  %p3761_p3 = scmp.lt.s32.totalorder %s3755_s7, %s3755_s7 }
  0x2a   :  { %v121_v7 = vld [vmem:[#allocation7 + $0x1a0] sm:$0xff]  ;;  %2468 = vmatpush1.bf16.msra.mxu0 %v3348_v5 }
  0x2b   :  { %v3341_v10 = vcombine.high %v117_v6, %v121_v7  ;;  %v245_v11 = vld [vmem:[#allocation7 + $0x580] sm:$0xff]  ;;  %2508 = vmatprep.subr.bf16.mxu1 %v3477_v8  ;;  %v3340_v18 = vcombine.low %v117_v6, %v121_v7  ;;  %p3762_p4 = por %p3761_p3, %p3760_p2 }
  0x2c   :  { %v249_v12 = vld [vmem:[#allocation7 + $0x5a0] sm:$0xff]  ;;  %2509 = vmatpush1.bf16.msra.mxu1 %v3476_v9 }
  0x2d   :  { %v109_v13 = vld [vmem:[#allocation7 + $0x140] sm:$0xff]  ;;  %v3469_v14 = vcombine.high %v245_v11, %v249_v12  ;;  %2469 = vmatprep.subr.bf16.mxu0 %v3341_v10  ;;  %v3468_v19 = vcombine.low %v245_v11, %v249_v12  ;;  %p3763_p5 = pnand %p3762_p4, %p3756_p1 }
  0x2e   :  { %v113_v15 = vld [vmem:[#allocation7 + $0x160] sm:$0xff]  ;;  %2470 = vmatpush1.bf16.msra.mxu0 %v3340_v18 }
  0x2f   :  { %v237_v16 = vld [vmem:[#allocation7 + $0x540] sm:$0xff]  ;;  %v3333_v20 = vcombine.high %v109_v13, %v113_v15  ;;  %2510 = vmatprep.subr.bf16.mxu1 %v3469_v14  ;;  %v3332_v26 = vcombine.low %v109_v13, %v113_v15 }
  0x30   :  { %v241_v17 = vld [vmem:[#allocation7 + $0x560] sm:$0xff]  ;;  %2511 = vmatpush1.bf16.msra.mxu1 %v3468_v19 }
  0x31   :  { %v3461_v21 = vcombine.high %v237_v16, %v241_v17  ;;  %v101_v22 = vld [vmem:[#allocation7 + $0x100] sm:$0xff]  ;;  %2471 = vmatprep.subr.bf16.mxu0 %v3333_v20  ;;  %v3460_v27 = vcombine.low %v237_v16, %v241_v17 }
  0x32   :  { %v105_v23 = vld [vmem:[#allocation7 + $0x120] sm:$0xff]  ;;  %2472 = vmatpush1.bf16.msra.mxu0 %v3332_v26 }
  0x33   :  { %v229_v24 = vld [vmem:[#allocation7 + $0x500] sm:$0xff]  ;;  %v3325_v28 = vcombine.high %v101_v22, %v105_v23  ;;  %2512 = vmatprep.subr.bf16.mxu1 %v3461_v21  ;;  %v3324_v34 = vcombine.low %v101_v22, %v105_v23 }
  0x34   :  { %v233_v25 = vld [vmem:[#allocation7 + $0x520] sm:$0xff]  ;;  %2513 = vmatpush1.bf16.msra.mxu1 %v3460_v27 }
  0x35   :  { %v3453_v29 = vcombine.high %v229_v24, %v233_v25  ;;  %v93_v30 = vld [vmem:[#allocation7 + $0xc0] sm:$0xff]  ;;  %2473 = vmatprep.subr.bf16.mxu0 %v3325_v28  ;;  %v3452_v35 = vcombine.low %v229_v24, %v233_v25 }
  0x36   :  { %v97_v31 = vld [vmem:[#allocation7 + $0xe0] sm:$0xff]  ;;  %2474 = vmatpush1.bf16.msra.mxu0 %v3324_v34 }
  0x37   :  { %v221_v32 = vld [vmem:[#allocation7 + $0x4c0] sm:$0xff]  ;;  %v3317_v36 = vcombine.high %v93_v30, %v97_v31  ;;  %2514 = vmatprep.subr.bf16.mxu1 %v3453_v29  ;;  %v3316_v42 = vcombine.low %v93_v30, %v97_v31 }
  0x38   :  { %v225_v33 = vld [vmem:[#allocation7 + $0x4e0] sm:$0xff]  ;;  %2515 = vmatpush1.bf16.msra.mxu1 %v3452_v35 }
  0x39   :  { %v3445_v37 = vcombine.high %v221_v32, %v225_v33  ;;  %v85_v38 = vld [vmem:[#allocation7 + $0x80] sm:$0xff]  ;;  %2475 = vmatprep.subr.bf16.mxu0 %v3317_v36  ;;  %v3444_v43 = vcombine.low %v221_v32, %v225_v33 }
  0x3a   :  { %v89_v39 = vld [vmem:[#allocation7 + $0xa0] sm:$0xff]  ;;  %2476 = vmatpush1.bf16.msra.mxu0 %v3316_v42 }
  0x3b   :  { %v213_v40 = vld [vmem:[#allocation7 + $0x480] sm:$0xff]  ;;  %v3309_v44 = vcombine.high %v85_v38, %v89_v39  ;;  %2516 = vmatprep.subr.bf16.mxu1 %v3445_v37  ;;  %v3308_v50 = vcombine.low %v85_v38, %v89_v39 }
  0x3c   :  { %v217_v41 = vld [vmem:[#allocation7 + $0x4a0] sm:$0xff]  ;;  %2517 = vmatpush1.bf16.msra.mxu1 %v3444_v43 }
  0x3d   :  { %v3437_v45 = vcombine.high %v213_v40, %v217_v41  ;;  %v77_v46 = vld [vmem:[#allocation7 + $0x40] sm:$0xff]  ;;  %2477 = vmatprep.subr.bf16.mxu0 %v3309_v44  ;;  %v3436_v51 = vcombine.low %v213_v40, %v217_v41 }
  0x3e   :  { %v81_v47 = vld [vmem:[#allocation7 + $0x60] sm:$0xff]  ;;  %2478 = vmatpush1.bf16.msra.mxu0 %v3308_v50 }
  0x3f   :  { %v205_v48 = vld [vmem:[#allocation7 + $0x440] sm:$0xff]  ;;  %v3301_v52 = vcombine.high %v77_v46, %v81_v47  ;;  %2518 = vmatprep.subr.bf16.mxu1 %v3437_v45  ;;  %v3300_v62 = vcombine.low %v77_v46, %v81_v47 }
  0x40   :  { %v209_v49 = vld [vmem:[#allocation7 + $0x460] sm:$0xff]  ;;  %2519 = vmatpush1.bf16.msra.mxu1 %v3436_v51 }
  0x41   :  { %v58_v54 = vld [vmem:[#allocation4 + $0x18] sm:$0xff]  ;;  %v3429_v55 = vcombine.high %v205_v48, %v209_v49  ;;  %2479 = vmatprep.subr.bf16.mxu0 %v3301_v52  ;;  %v3428_v63 = vcombine.low %v205_v48, %v209_v49 }
  0x42   :  { %v69_v56 = vld [vmem:[#allocation7] sm:$0xff]  ;;  %v3824_v59 = vpack.c.bf16 %v58_v54, %v58_v54  ;;  %2480 = vmatpush1.bf16.msra.mxu0 %v3300_v62 }
  0x43   :  { %v73_v57 = vld [vmem:[#allocation7 + $0x20] sm:$0xff]  ;;  %2520 = vmatprep.subr.bf16.mxu1 %v3429_v55 }
  0x44   :  { %v197_v60 = vld [vmem:[#allocation7 + $0x400] sm:$0xff]  ;;  %v3293_v0 = vcombine.high %v69_v56, %v73_v57  ;;  %2540 = vmatprep.mubr.bf16.mxu1 %v3824_v59  ;;  %v3292_v6 = vcombine.low %v69_v56, %v73_v57  ;;  %2521 = vmatpush1.bf16.msra.mxu1 %v3428_v63 }
  0x45   :  { %v201_v61 = vld [vmem:[#allocation7 + $0x420] sm:$0xff] }
  0x46   :  { %v3421_v1 = vcombine.high %v197_v60, %v201_v61  ;;  %v189_v2 = vld [vmem:[#allocation7 + $0x3c0] sm:$0xff]  ;;  %2481 = vmatprep.subr.bf16.mxu0 %v3293_v0  ;;  %v3420_v7 = vcombine.low %v197_v60, %v201_v61 }
  0x47   :  { %v193_v3 = vld [vmem:[#allocation7 + $0x3e0] sm:$0xff]  ;;  %2482 = vmatpush1.bf16.msra.mxu0 %v3292_v6 }
  0x48   :  { %v317_v4 = vld [vmem:[#allocation7 + $0x7c0] sm:$0xff]  ;;  %v3413_v8 = vcombine.high %v189_v2, %v193_v3  ;;  %2522 = vmatprep.subr.bf16.mxu1 %v3421_v1  ;;  %v3412_v14 = vcombine.low %v189_v2, %v193_v3 }
  0x49   :  { %v321_v5 = vld [vmem:[#allocation7 + $0x7e0] sm:$0xff]  ;;  %2523 = vmatpush1.bf16.msra.mxu1 %v3420_v7 }
  0x4a   :  { %v3541_v9 = vcombine.high %v317_v4, %v321_v5  ;;  %v181_v10 = vld [vmem:[#allocation7 + $0x380] sm:$0xff]  ;;  %2483 = vmatprep.subr.bf16.mxu0 %v3413_v8  ;;  %v3540_v15 = vcombine.low %v317_v4, %v321_v5 }
  0x4b   :  { %v185_v11 = vld [vmem:[#allocation7 + $0x3a0] sm:$0xff]  ;;  %2484 = vmatpush2.bf16.msra.mxu0 %v3412_v14 }
  0x4c   :  { %v309_v12 = vld [vmem:[#allocation7 + $0x780] sm:$0xff]  ;;  %v3405_v16 = vcombine.high %v181_v10, %v185_v11  ;;  %2524 = vmatprep.subr.bf16.mxu1 %v3541_v9  ;;  %v3404_v22 = vcombine.low %v181_v10, %v185_v11  ;;  %v55_v9 = vld [vmem:[#allocation4] sm:$0xff]  ;;  %v57_v11 = vld [vmem:[#allocation4 + $0x10] sm:$0xff] }
  0x4d   :  { %v313_v13 = vld [vmem:[#allocation7 + $0x7a0] sm:$0xff]  ;;  %2525 = vmatpush2.bf16.msra.mxu1 %v3540_v15 }
  0x4e   :  { %v3533_v17 = vcombine.high %v309_v12, %v313_v13  ;;  %v173_v18 = vld [vmem:[#allocation7 + $0x340] sm:$0xff]  ;;  %2485 = vmatprep.subr.bf16.mxu0 %v3405_v16  ;;  %v3532_v23 = vcombine.low %v309_v12, %v313_v13  ;;  %v3828_v16 = vpack.c.bf16 %v55_v9, %v55_v9 }
  0x4f   :  { %v177_v19 = vld [vmem:[#allocation7 + $0x360] sm:$0xff]  ;;  %2486 = vmatpush2.bf16.msra.mxu0 %v3404_v22 }
  0x50   :  { %v301_v20 = vld [vmem:[#allocation7 + $0x740] sm:$0xff]  ;;  %v3397_v24 = vcombine.high %v173_v18, %v177_v19  ;;  %2526 = vmatprep.subr.bf16.mxu1 %v3533_v17  ;;  %v3396_v30 = vcombine.low %v173_v18, %v177_v19  ;;  %v126_v17 = vld [vmem:[#allocation7 + $0x1c8] sm:$0xff]  ;;  %v3830_v19 = vpack.c.bf16 %v57_v11, %v57_v11 }
  0x51   :  { %v305_v21 = vld [vmem:[#allocation7 + $0x760] sm:$0xff]  ;;  %2527 = vmatpush2.bf16.msra.mxu1 %v3532_v23  ;;  %v130_v18 = vld [vmem:[#allocation7 + $0x1e8] sm:$0xff] }
  0x52   :  { %v3525_v25 = vcombine.high %v301_v20, %v305_v21  ;;  %v165_v26 = vld [vmem:[#allocation7 + $0x300] sm:$0xff]  ;;  %2487 = vmatprep.subr.bf16.mxu0 %v3397_v24  ;;  %v3524_v31 = vcombine.low %v301_v20, %v305_v21  ;;  %v60_v21 = vld [vmem:[#allocation4 + $0x28] sm:$0xff]  ;;  %v3351_v24 = vcombine.high %v126_v17, %v130_v18 }
  0x53   :  { %v169_v27 = vld [vmem:[#allocation7 + $0x320] sm:$0xff]  ;;  %2488 = vmatpush2.bf16.msra.mxu0 %v3396_v30  ;;  %v61_v30 = vld [vmem:[#allocation4 + $0x30] sm:$0xff] }
  0x54   :  { %v293_v28 = vld [vmem:[#allocation7 + $0x700] sm:$0xff]  ;;  %v3389_v32 = vcombine.high %v165_v26, %v169_v27  ;;  %2528 = vmatprep.subr.bf16.mxu1 %v3525_v25  ;;  %v3388_v38 = vcombine.low %v165_v26, %v169_v27  ;;  %v3833_v27 = vpack.c.bf16 %v60_v21, %v60_v21 }
  0x55   :  { %v297_v29 = vld [vmem:[#allocation7 + $0x720] sm:$0xff]  ;;  %2529 = vmatpush2.bf16.msra.mxu1 %v3524_v31  ;;  %v3786_v31 = vmov 0  }
  0x56   :  { %v3517_v33 = vcombine.high %v293_v28, %v297_v29  ;;  %v157_v34 = vld [vmem:[#allocation7 + $0x2c0] sm:$0xff]  ;;  %2489 = vmatprep.subr.bf16.mxu0 %v3389_v32  ;;  %v3516_v39 = vcombine.low %v293_v28, %v297_v29 }
  0x57   :  { %v161_v35 = vld [vmem:[#allocation7 + $0x2e0] sm:$0xff]  ;;  %2490 = vmatpush2.bf16.msra.mxu0 %v3388_v38  ;;  %v3350_v38 = vcombine.low %v126_v17, %v130_v18 }
  0x58   :  { %v285_v36 = vld [vmem:[#allocation7 + $0x6c0] sm:$0xff]  ;;  %v3381_v40 = vcombine.high %v157_v34, %v161_v35  ;;  %2530 = vmatprep.subr.bf16.mxu1 %v3517_v33  ;;  %v3380_v46 = vcombine.low %v157_v34, %v161_v35  ;;  %v118_v34 = vld [vmem:[#allocation7 + $0x188] sm:$0xff] }
  0x59   :  { %v289_v37 = vld [vmem:[#allocation7 + $0x6e0] sm:$0xff]  ;;  %2531 = vmatpush2.bf16.msra.mxu1 %v3516_v39  ;;  %v122_v35 = vld [vmem:[#allocation7 + $0x1a8] sm:$0xff] }
  0x5a   :  { %v3509_v41 = vcombine.high %v285_v36, %v289_v37  ;;  %v149_v42 = vld [vmem:[#allocation7 + $0x280] sm:$0xff]  ;;  %2491 = vmatprep.subr.bf16.mxu0 %v3381_v40  ;;  %v3508_v47 = vcombine.low %v285_v36, %v289_v37  ;;  %v3838_v37 = vpack.c.bf16 %v61_v30, %v61_v30  ;;  %v3343_v40 = vcombine.high %v118_v34, %v122_v35 }
  0x5b   :  { %v153_v43 = vld [vmem:[#allocation7 + $0x2a0] sm:$0xff]  ;;  %2492 = vmatpush2.bf16.msra.mxu0 %v3380_v46  ;;  %v3342_v46 = vcombine.low %v118_v34, %v122_v35  ;;  %v194_v34 = vld [vmem:[#allocation7 + $0x3e8] sm:$0xff] }
  0x5c   :  { %v277_v44 = vld [vmem:[#allocation7 + $0x680] sm:$0xff]  ;;  %v3373_v48 = vcombine.high %v149_v42, %v153_v43  ;;  %2532 = vmatprep.subr.bf16.mxu1 %v3509_v41  ;;  %v3372_v54 = vcombine.low %v149_v42, %v153_v43  ;;  %v110_v43 = vld [vmem:[#allocation7 + $0x148] sm:$0xff] }
  0x5d   :  { %v281_v45 = vld [vmem:[#allocation7 + $0x6a0] sm:$0xff]  ;;  %2533 = vmatpush2.bf16.msra.mxu1 %v3508_v47 }
  0x5e   :  { %v3501_v49 = vcombine.high %v277_v44, %v281_v45  ;;  %v141_v50 = vld [vmem:[#allocation7 + $0x240] sm:$0xff]  ;;  %2493 = vmatprep.subr.bf16.mxu0 %v3373_v48  ;;  %v3500_v55 = vcombine.low %v277_v44, %v281_v45  ;;  %v114_v44 = vld [vmem:[#allocation7 + $0x168] sm:$0xff] }
  0x5f   :  { %v145_v51 = vld [vmem:[#allocation7 + $0x260] sm:$0xff]  ;;  %2494 = vmatpush2.bf16.msra.mxu0 %v3372_v54  ;;  %v3335_v48 = vcombine.high %v110_v43, %v114_v44  ;;  %v3334_v54 = vcombine.low %v110_v43, %v114_v44  ;;  %v186_v43 = vld [vmem:[#allocation7 + $0x3a8] sm:$0xff] }
  0x60   :  { %v269_v52 = vld [vmem:[#allocation7 + $0x640] sm:$0xff]  ;;  %v3365_v56 = vcombine.high %v141_v50, %v145_v51  ;;  %2534 = vmatprep.subr.bf16.mxu1 %v3501_v49  ;;  %v3364_v0 = vcombine.low %v141_v50, %v145_v51  ;;  %v102_v51 = vld [vmem:[#allocation7 + $0x108] sm:$0xff] }
  0x61   :  { %v273_v53 = vld [vmem:[#allocation7 + $0x660] sm:$0xff]  ;;  %2535 = vmatpush2.bf16.msra.mxu1 %v3500_v55 }
  0x62   :  { %v3493_v57 = vcombine.high %v269_v52, %v273_v53  ;;  %v133_v60 = vld [vmem:[#allocation7 + $0x200] sm:$0xff]  ;;  %2495 = vmatprep.subr.bf16.mxu0 %v3365_v56  ;;  %v3492_v1 = vcombine.low %v269_v52, %v273_v53  ;;  %v106_v52 = vld [vmem:[#allocation7 + $0x128] sm:$0xff] }
  0x63   :  { %v137_v61 = vld [vmem:[#allocation7 + $0x220] sm:$0xff]  ;;  %2496 = vmatpush2.bf16.msra.mxu0 %v3364_v0  ;;  %v3327_v56 = vcombine.high %v102_v51, %v106_v52  ;;  %v3326_v0 = vcombine.low %v102_v51, %v106_v52  ;;  %v178_v51 = vld [vmem:[#allocation7 + $0x368] sm:$0xff] }
  0x64   :  { %v261_v62 = vld [vmem:[#allocation7 + $0x600] sm:$0xff]  ;;  %v3357_v2 = vcombine.high %v133_v60, %v137_v61  ;;  %2536 = vmatprep.subr.bf16.mxu1 %v3493_v57  ;;  %v3356_v8 = vcombine.low %v133_v60, %v137_v61  ;;  %v94_v61 = vld [vmem:[#allocation7 + $0xc8] sm:$0xff] }
  0x65   :  { %v265_v63 = vld [vmem:[#allocation7 + $0x620] sm:$0xff]  ;;  %2537 = vmatpush2.bf16.msra.mxu1 %v3492_v1 }
  0x66   :  { %v3485_v3 = vcombine.high %v261_v62, %v265_v63  ;;  %v381_v4 = vld [vmem:[#allocation7 + $0x9c0] sm:$0xff]  ;;  %2497 = vmatprep.subr.bf16.mxu0 %v3357_v2  ;;  %v3484_v10 = vcombine.low %v261_v62, %v265_v63  ;;  %v98_v62 = vld [vmem:[#allocation7 + $0xe8] sm:$0xff] }
  0x67   :  { %v385_v5 = vld [vmem:[#allocation7 + $0x9e0] sm:$0xff]  ;;  %2498 = vmatpush2.bf16.msra.mxu0 %v3356_v8  ;;  %v3319_v2 = vcombine.high %v94_v61, %v98_v62  ;;  %v3318_v8 = vcombine.low %v94_v61, %v98_v62  ;;  %v170_v61 = vld [vmem:[#allocation7 + $0x328] sm:$0xff] }
  0x68   :  { %v453_v6 = vld [vmem:[#allocation7 + $0xc00] sm:$0xff]  ;;  %v3605_v12 = vcombine.high %v381_v4, %v385_v5  ;;  %2538 = vmatprep.subr.bf16.mxu1 %v3485_v3  ;;  %v3604_v20 = vcombine.low %v381_v4, %v385_v5  ;;  %v86_v5 = vld [vmem:[#allocation7 + $0x88] sm:$0xff] }
  0x69   :  { %v457_v7 = vld [vmem:[#allocation7 + $0xc20] sm:$0xff]  ;;  %2539 = vmatpush2.bf16.msra.mxu1 %v3484_v10 }
  0x6a   :  { %v3677_v13 = vcombine.high %v453_v6, %v457_v7  ;;  %v373_v14 = vld [vmem:[#allocation7 + $0x980] sm:$0xff]  ;;  %2549 = vmatprep.subr.bf16.mxu0 %v3605_v12  ;;  %v3676_v22 = vcombine.low %v453_v6, %v457_v7  ;;  %2500 = vmatmul.mubr.bf16.vlgmr.msra.gmra.mxu0 %v3828_v16  ;;  %v90_v6 = vld [vmem:[#allocation7 + $0xa8] sm:$0xff] }
  0x6b   :  { %v377_v15 = vld [vmem:[#allocation7 + $0x9a0] sm:$0xff]  ;;  %2550 = vmatpush1.bf16.msra.mxu0 %v3604_v20  ;;  %2581 = vmatprep.mubr.bf16.mxu0 %v3833_v27  ;;  %v3311_v10 = vcombine.high %v86_v5, %v90_v6  ;;  %v3310_v17 = vcombine.low %v86_v5, %v90_v6  ;;  %v162_v5 = vld [vmem:[#allocation7 + $0x2e8] sm:$0xff] }
  0x6c   :  { %v3597_v23 = vcombine.high %v373_v14, %v377_v15  ;;  %2604 = vmatprep.subr.bf16.mxu1 %v3677_v13  ;;  %v365_v25 = vld [vmem:[#allocation7 + $0x940] sm:$0xff]  ;;  %2541 = vmatmul.mubr.bf16.vlgmr.msra.gmra.mxu1 %v3830_v19  ;;  %v3596_v28 = vcombine.low %v373_v14, %v377_v15  ;;  %v78_v13 = vld [vmem:[#allocation7 + $0x48] sm:$0xff] }
  0x6d   :  { %v369_v26 = vld [vmem:[#allocation7 + $0x960] sm:$0xff]  ;;  %2605 = vmatpush1.bf16.msra.mxu1 %v3676_v22  ;;  %2622 = vmatprep.mubr.bf16.mxu1 %v3786_v31  ;;  %v82_v14 = vld [vmem:[#allocation7 + $0x68] sm:$0xff] }
  0x6e   :  { %2551 = vmatprep.subr.bf16.mxu0 %v3597_v23  ;;  %v3589_v29 = vcombine.high %v365_v25, %v369_v26  ;;  %2631 = vmatprep.subr.bf16.mxu1 %v3351_v24  ;;  %v357_v32 = vld [vmem:[#allocation7 + $0x900] sm:$0xff]  ;;  %v3588_v36 = vcombine.low %v365_v25, %v369_v26  ;;  %v3303_v20 = vcombine.high %v78_v13, %v82_v14  ;;  %v70_v23 = vld [vmem:[#allocation7 + $0x8] sm:$0xff] }
  0x6f   :  { %v361_v33 = vld [vmem:[#allocation7 + $0x920] sm:$0xff]  ;;  %2552 = vmatpush1.bf16.msra.mxu0 %v3596_v28  ;;  %v74_v24 = vld [vmem:[#allocation7 + $0x28] sm:$0xff]  ;;  %v3302_v26 = vcombine.low %v78_v13, %v82_v14 }
  0x70   :  { %2553 = vmatprep.subr.bf16.mxu0 %v3589_v29  ;;  %v3581_v39 = vcombine.high %v357_v32, %v361_v33  ;;  %v349_v41 = vld [vmem:[#allocation7 + $0x8c0] sm:$0xff]  ;;  %v3580_v45 = vcombine.low %v357_v32, %v361_v33  ;;  %v3295_v29 = vcombine.high %v70_v23, %v74_v24  ;;  %v190_v33 = vld [vmem:[#allocation7 + $0x3c8] sm:$0xff] }
  0x71   :  { %v353_v42 = vld [vmem:[#allocation7 + $0x8e0] sm:$0xff]  ;;  %v154_v13 = vld [vmem:[#allocation7 + $0x2a8] sm:$0xff] }
  0x72   :  { %v3573_v47 = vcombine.high %v349_v41, %v353_v42  ;;  %v341_v49 = vld [vmem:[#allocation7 + $0x880] sm:$0xff]  ;;  %v3572_v53 = vcombine.low %v349_v41, %v353_v42  ;;  %v182_v42 = vld [vmem:[#allocation7 + $0x388] sm:$0xff] }
  0x73   :  { %2554 = vmatpush1.bf16.msra.mxu0 %v3588_v36  ;;  %v345_v50 = vld [vmem:[#allocation7 + $0x8a0] sm:$0xff]  ;;  %v3294_v36 = vcombine.low %v70_v23, %v74_v24  ;;  %v146_v23 = vld [vmem:[#allocation7 + $0x268] sm:$0xff] }
  0x74   :  { %3684 = vmatmul.mubr.msk.bf16.vlgmr.msra.gmra.mxu1 %vm2463_vm0, %v3838_v37  ;;  %2555 = vmatprep.subr.bf16.mxu0 %v3581_v39  ;;  %v3565_v55 = vcombine.high %v341_v49, %v345_v50  ;;  %v333_v57 = vld [vmem:[#allocation7 + $0x840] sm:$0xff]  ;;  %v3564_v63 = vcombine.low %v341_v49, %v345_v50  ;;  %v3415_v39 = vcombine.high %v190_v33, %v194_v34  ;;  %v174_v50 = vld [vmem:[#allocation7 + $0x348] sm:$0xff] }
  0x75   :  { %2632 = vmatpush1.bf16.msra.mxu1 %v3350_v38  ;;  %2663 = vmatprep.mubr.bf16.mxu1 %v3822_v58  ;;  %v337_v60 = vld [vmem:[#allocation7 + $0x860] sm:$0xff] }
  0x76   :  { %2633 = vmatprep.subr.bf16.mxu1 %v3343_v40  ;;  %v3557_v1 = vcombine.high %v333_v57, %v337_v60  ;;  %v325_v3 = vld [vmem:[#allocation7 + $0x800] sm:$0xff]  ;;  %v3556_v7 = vcombine.low %v333_v57, %v337_v60  ;;  %v166_v60 = vld [vmem:[#allocation7 + $0x308] sm:$0xff] }
  0x77   :  { %2556 = vmatpush1.bf16.msra.mxu0 %v3580_v45  ;;  %v329_v4 = vld [vmem:[#allocation7 + $0x820] sm:$0xff]  ;;  %v3414_v45 = vcombine.low %v190_v33, %v194_v34  ;;  %v134_v34 = vld [vmem:[#allocation7 + $0x208] sm:$0xff] }
  0x78   :  { %2557 = vmatprep.subr.bf16.mxu0 %v3573_v47  ;;  %v3549_v9 = vcombine.high %v325_v3, %v329_v4  ;;  %v445_v11 = vld [vmem:[#allocation7 + $0xbc0] sm:$0xff]  ;;  %v3548_v15 = vcombine.low %v325_v3, %v329_v4  ;;  %v3407_v47 = vcombine.high %v182_v42, %v186_v43  ;;  %v158_v4 = vld [vmem:[#allocation7 + $0x2c8] sm:$0xff] }
  0x79   :  { %2634 = vmatpush1.bf16.msra.mxu1 %v3342_v46  ;;  %v449_v12 = vld [vmem:[#allocation7 + $0xbe0] sm:$0xff] }
  0x7a   :  { %2635 = vmatprep.subr.bf16.mxu1 %v3335_v48  ;;  %v3669_v18 = vcombine.high %v445_v11, %v449_v12  ;;  %v437_v21 = vld [vmem:[#allocation7 + $0xb80] sm:$0xff]  ;;  %v3668_v25 = vcombine.low %v445_v11, %v449_v12  ;;  %v150_v12 = vld [vmem:[#allocation7 + $0x288] sm:$0xff] }
  0x7b   :  { %2558 = vmatpush1.bf16.msra.mxu0 %v3572_v53  ;;  %v441_v22 = vld [vmem:[#allocation7 + $0xba0] sm:$0xff]  ;;  %v3406_v53 = vcombine.low %v182_v42, %v186_v43  ;;  %v242_v42 = vld [vmem:[#allocation7 + $0x568] sm:$0xff] }
  0x7c   :  { %2559 = vmatprep.subr.bf16.mxu0 %v3565_v55  ;;  %v3661_v28 = vcombine.high %v437_v21, %v441_v22  ;;  %v429_v30 = vld [vmem:[#allocation7 + $0xb40] sm:$0xff]  ;;  %v3660_v35 = vcombine.low %v437_v21, %v441_v22  ;;  %v3399_v55 = vcombine.high %v174_v50, %v178_v51  ;;  %v258_v21 = vld [vmem:[#allocation7 + $0x5e8] sm:$0xff] }
  0x7d   :  { %2636 = vmatpush1.bf16.msra.mxu1 %v3334_v54  ;;  %v433_v32 = vld [vmem:[#allocation7 + $0xb60] sm:$0xff]  ;;  %v142_v22 = vld [vmem:[#allocation7 + $0x248] sm:$0xff] }
  0x7e   :  { %2637 = vmatprep.subr.bf16.mxu1 %v3327_v56  ;;  %v3653_v38 = vcombine.high %v429_v30, %v433_v32  ;;  %v421_v40 = vld [vmem:[#allocation7 + $0xb00] sm:$0xff]  ;;  %v3652_v44 = vcombine.low %v429_v30, %v433_v32  ;;  %v246_v30 = vld [vmem:[#allocation7 + $0x588] sm:$0xff] }
  0x7f   :  { %2560 = vmatpush1.bf16.msra.mxu0 %v3564_v63  ;;  %v425_v41 = vld [vmem:[#allocation7 + $0xb20] sm:$0xff]  ;;  %v3398_v63 = vcombine.low %v174_v50, %v178_v51  ;;  %v250_v32 = vld [vmem:[#allocation7 + $0x5a8] sm:$0xff] }
  0x80   :  { %2561 = vmatprep.subr.bf16.mxu0 %v3557_v1  ;;  %v3645_v46 = vcombine.high %v421_v40, %v425_v41  ;;  %v413_v48 = vld [vmem:[#allocation7 + $0xac0] sm:$0xff]  ;;  %v3644_v52 = vcombine.low %v421_v40, %v425_v41  ;;  %v3391_v1 = vcombine.high %v166_v60, %v170_v61  ;;  %v238_v41 = vld [vmem:[#allocation7 + $0x548] sm:$0xff] }
  0x81   :  { %2638 = vmatpush1.bf16.msra.mxu1 %v3326_v0  ;;  %v417_v49 = vld [vmem:[#allocation7 + $0xae0] sm:$0xff]  ;;  %v382_v43 = vld [vmem:[#allocation7 + $0x9c8] sm:$0xff] }
  0x82   :  { %2639 = vmatprep.subr.bf16.mxu1 %v3319_v2  ;;  %v3637_v54 = vcombine.high %v413_v48, %v417_v49  ;;  %v405_v56 = vld [vmem:[#allocation7 + $0xa80] sm:$0xff]  ;;  %v3636_v62 = vcombine.low %v413_v48, %v417_v49  ;;  %v230_v49 = vld [vmem:[#allocation7 + $0x508] sm:$0xff] }
  0x83   :  { %2562 = vmatpush1.bf16.msra.mxu0 %v3556_v7  ;;  %v409_v57 = vld [vmem:[#allocation7 + $0xaa0] sm:$0xff]  ;;  %v3390_v7 = vcombine.low %v166_v60, %v170_v61  ;;  %v234_v50 = vld [vmem:[#allocation7 + $0x528] sm:$0xff] }
  0x84   :  { %2563 = vmatprep.subr.bf16.mxu0 %v3549_v9  ;;  %v3629_v0 = vcombine.high %v405_v56, %v409_v57  ;;  %v397_v2 = vld [vmem:[#allocation7 + $0xa40] sm:$0xff]  ;;  %v3628_v6 = vcombine.low %v405_v56, %v409_v57  ;;  %v3383_v9 = vcombine.high %v158_v4, %v162_v5  ;;  %v374_v51 = vld [vmem:[#allocation7 + $0x988] sm:$0xff] }
  0x85   :  { %2640 = vmatpush1.bf16.msra.mxu1 %v3318_v8  ;;  %v401_v3 = vld [vmem:[#allocation7 + $0xa60] sm:$0xff]  ;;  %v222_v57 = vld [vmem:[#allocation7 + $0x4c8] sm:$0xff] }
  0x86   :  { %2641 = vmatprep.subr.bf16.mxu1 %v3311_v10  ;;  %v3621_v8 = vcombine.high %v397_v2, %v401_v3  ;;  %v389_v10 = vld [vmem:[#allocation7 + $0xa00] sm:$0xff]  ;;  %v3620_v14 = vcombine.low %v397_v2, %v401_v3  ;;  %v226_v60 = vld [vmem:[#allocation7 + $0x4e8] sm:$0xff] }
  0x87   :  { %2564 = vmatpush1.bf16.msra.mxu0 %v3548_v15  ;;  %v393_v11 = vld [vmem:[#allocation7 + $0xa20] sm:$0xff]  ;;  %v3382_v15 = vcombine.low %v158_v4, %v162_v5  ;;  %v366_v61 = vld [vmem:[#allocation7 + $0x948] sm:$0xff] }
  0x88   :  { %2565 = vmatprep.subr.bf16.mxu0 %v3669_v18  ;;  %v3375_v18 = vcombine.high %v150_v12, %v154_v13  ;;  %v3612_v24 = vcombine.low %v389_v10, %v393_v11  ;;  %v214_v3 = vld [vmem:[#allocation7 + $0x488] sm:$0xff] }
  0x89   :  { %2642 = vmatpush1.bf16.msra.mxu1 %v3310_v17  ;;  %v3613_v17 = vcombine.high %v389_v10, %v393_v11  ;;  %v218_v4 = vld [vmem:[#allocation7 + $0x4a8] sm:$0xff] }
  0x8a   :  { %2643 = vmatprep.subr.bf16.mxu1 %v3303_v20  ;;  %v254_v20 = vld [vmem:[#allocation7 + $0x5c8] sm:$0xff] }
  0x8b   :  { %2566 = vmatpush2.bf16.msra.mxu0 %v3668_v25  ;;  %v59_v25 = vld [vmem:[#allocation4 + $0x20] sm:$0xff] }
  0x8c   :  { %2567 = vmatprep.subr.bf16.mxu0 %v3661_v28  ;;  %v3479_v28 = vcombine.high %v254_v20, %v258_v21  ;;  %v3843_v33 = vpack.c.bf16 %v59_v25, %v59_v25  ;;  %v358_v5 = vld [vmem:[#allocation7 + $0x908] sm:$0xff] }
  0x8d   :  { %2644 = vmatpush1.bf16.msra.mxu1 %v3302_v26  ;;  %v3374_v26 = vcombine.low %v150_v12, %v154_v13  ;;  %v206_v11 = vld [vmem:[#allocation7 + $0x448] sm:$0xff] }
  0x8e   :  { %2645 = vmatprep.subr.bf16.mxu1 %v3295_v29  ;;  %v3367_v29 = vcombine.high %v142_v22, %v146_v23  ;;  %v210_v12 = vld [vmem:[#allocation7 + $0x468] sm:$0xff] }
  0x8f   :  { %2568 = vmatpush2.bf16.msra.mxu0 %v3660_v35  ;;  %v138_v35 = vld [vmem:[#allocation7 + $0x228] sm:$0xff]  ;;  %v3430_v25 = vcombine.low %v206_v11, %v210_v12 }
  0x90   :  { %2569 = vmatprep.subr.bf16.mxu0 %v3653_v38  ;;  %v3366_v38 = vcombine.low %v142_v22, %v146_v23  ;;  %v3359_v40 = vcombine.high %v134_v34, %v138_v35  ;;  %v350_v13 = vld [vmem:[#allocation7 + $0x8c8] sm:$0xff] }
  0x91   :  { %2646 = vmatpush1.bf16.msra.mxu1 %v3294_v36  ;;  %v3478_v36 = vcombine.low %v254_v20, %v258_v21  ;;  %v198_v21 = vld [vmem:[#allocation7 + $0x408] sm:$0xff] }
  0x92   :  { %2647 = vmatprep.subr.bf16.mxu1 %v3415_v39  ;;  %v3471_v39 = vcombine.high %v246_v30, %v250_v32  ;;  %v202_v22 = vld [vmem:[#allocation7 + $0x428] sm:$0xff] }
  0x93   :  { %2570 = vmatpush2.bf16.msra.mxu0 %v3652_v44  ;;  %v386_v44 = vld [vmem:[#allocation7 + $0x9e8] sm:$0xff] }
  0x94   :  { %2571 = vmatprep.subr.bf16.mxu0 %v3645_v46  ;;  %v3358_v46 = vcombine.low %v134_v34, %v138_v35  ;;  %v3607_v48 = vcombine.high %v382_v43, %v386_v44  ;;  %v342_v23 = vld [vmem:[#allocation7 + $0x888] sm:$0xff] }
  0x95   :  { %2648 = vmatpush2.bf16.msra.mxu1 %v3414_v45  ;;  %v3470_v45 = vcombine.low %v246_v30, %v250_v32  ;;  %v318_v30 = vld [vmem:[#allocation7 + $0x7c8] sm:$0xff] }
  0x96   :  { %2649 = vmatprep.subr.bf16.mxu1 %v3407_v47  ;;  %v3463_v47 = vcombine.high %v238_v41, %v242_v42  ;;  %v322_v32 = vld [vmem:[#allocation7 + $0x7e8] sm:$0xff] }
  0x97   :  { %2572 = vmatpush2.bf16.msra.mxu0 %v3644_v52  ;;  %v378_v52 = vld [vmem:[#allocation7 + $0x9a8] sm:$0xff] }
  0x98   :  { %2573 = vmatprep.subr.bf16.mxu0 %v3637_v54  ;;  %v3606_v54 = vcombine.low %v382_v43, %v386_v44  ;;  %v3599_v56 = vcombine.high %v374_v51, %v378_v52  ;;  %v334_v34 = vld [vmem:[#allocation7 + $0x848] sm:$0xff] }
  0x99   :  { %2650 = vmatpush2.bf16.msra.mxu1 %v3406_v53  ;;  %v3462_v53 = vcombine.low %v238_v41, %v242_v42  ;;  %v338_v35 = vld [vmem:[#allocation7 + $0x868] sm:$0xff] }
  0x9a   :  { %2651 = vmatprep.subr.bf16.mxu1 %v3399_v55  ;;  %v3455_v55 = vcombine.high %v230_v49, %v234_v50  ;;  %v310_v41 = vld [vmem:[#allocation7 + $0x788] sm:$0xff] }
  0x9b   :  { %2574 = vmatpush2.bf16.msra.mxu0 %v3636_v62  ;;  %v370_v62 = vld [vmem:[#allocation7 + $0x968] sm:$0xff] }
  0x9c   :  { %2575 = vmatprep.subr.bf16.mxu0 %v3629_v0  ;;  %v3598_v0 = vcombine.low %v374_v51, %v378_v52  ;;  %v3591_v2 = vcombine.high %v366_v61, %v370_v62  ;;  %v314_v42 = vld [vmem:[#allocation7 + $0x7a8] sm:$0xff] }
  0x9d   :  { %2652 = vmatpush2.bf16.msra.mxu1 %v3398_v63  ;;  %v3454_v63 = vcombine.low %v230_v49, %v234_v50  ;;  %v326_v43 = vld [vmem:[#allocation7 + $0x808] sm:$0xff] }
  0x9e   :  { %2653 = vmatprep.subr.bf16.mxu1 %v3391_v1  ;;  %v3447_v1 = vcombine.high %v222_v57, %v226_v60  ;;  %v330_v44 = vld [vmem:[#allocation7 + $0x828] sm:$0xff] }
  0x9f   :  { %2576 = vmatpush2.bf16.msra.mxu0 %v3628_v6  ;;  %v362_v6 = vld [vmem:[#allocation7 + $0x928] sm:$0xff] }
  0xa0   :  { %2577 = vmatprep.subr.bf16.mxu0 %v3621_v8  ;;  %v3590_v8 = vcombine.low %v366_v61, %v370_v62  ;;  %v3583_v10 = vcombine.high %v358_v5, %v362_v6  ;;  %v302_v49 = vld [vmem:[#allocation7 + $0x748] sm:$0xff] }
  0xa1   :  { %2654 = vmatpush2.bf16.msra.mxu1 %v3390_v7  ;;  %v3446_v7 = vcombine.low %v222_v57, %v226_v60  ;;  %v306_v50 = vld [vmem:[#allocation7 + $0x768] sm:$0xff] }
  0xa2   :  { %2655 = vmatprep.subr.bf16.mxu1 %v3383_v9  ;;  %v3439_v9 = vcombine.high %v214_v3, %v218_v4  ;;  %v446_v51 = vld [vmem:[#allocation7 + $0xbc8] sm:$0xff] }
  0xa3   :  { %2578 = vmatpush2.bf16.msra.mxu0 %v3620_v14  ;;  %v354_v14 = vld [vmem:[#allocation7 + $0x8e8] sm:$0xff] }
  0xa4   :  { %2579 = vmatprep.subr.bf16.mxu0 %v3613_v17  ;;  %v3582_v17 = vcombine.low %v358_v5, %v362_v6  ;;  %v3575_v20 = vcombine.high %v350_v13, %v354_v14  ;;  %v450_v52 = vld [vmem:[#allocation7 + $0xbe8] sm:$0xff] }
  0xa5   :  { %2656 = vmatpush2.bf16.msra.mxu1 %v3382_v15  ;;  %v3438_v15 = vcombine.low %v214_v3, %v218_v4  ;;  %v294_v57 = vld [vmem:[#allocation7 + $0x708] sm:$0xff] }
  0xa6   :  { %2657 = vmatprep.subr.bf16.mxu1 %v3375_v18  ;;  %v3431_v18 = vcombine.high %v206_v11, %v210_v12  ;;  %v298_v60 = vld [vmem:[#allocation7 + $0x728] sm:$0xff] }
  0xa7   :  { %2580 = vmatpush2.bf16.msra.mxu0 %v3612_v24  ;;  %v346_v24 = vld [vmem:[#allocation7 + $0x8a8] sm:$0xff] }
  0xa8   :  { %2672 = vmatprep.subr.bf16.mxu0 %v3479_v28  ;;  %v3423_v28 = vcombine.high %v198_v21, %v202_v22  ;;  %v438_v61 = vld [vmem:[#allocation7 + $0xb88] sm:$0xff] }
  0xa9   :  { %2658 = vmatpush2.bf16.msra.mxu1 %v3374_v26  ;;  %v3574_v26 = vcombine.low %v350_v13, %v354_v14  ;;  %v442_v62 = vld [vmem:[#allocation7 + $0xba8] sm:$0xff] }
  0xaa   :  { %2659 = vmatprep.subr.bf16.mxu1 %v3367_v29  ;;  %2582 = vmatmul.mubr.bf16.vlgmr.msra.gmra.mxu0 %v3843_v33  ;;  %v3567_v29 = vcombine.high %v342_v23, %v346_v24  ;;  %v286_v3 = vld [vmem:[#allocation7 + $0x6c8] sm:$0xff] }
  0xab   :  { %2673 = vmatpush1.bf16.msra.mxu0 %v3478_v36  ;;  %2704 = vmatprep.mubr.bf16.mxu0 %v3824_v59  ;;  %v3422_v36 = vcombine.low %v198_v21, %v202_v22  ;;  %v290_v4 = vld [vmem:[#allocation7 + $0x6e8] sm:$0xff] }
  0xac   :  { %2674 = vmatprep.subr.bf16.mxu0 %v3471_v39  ;;  %v3543_v39 = vcombine.high %v318_v30, %v322_v32  ;;  %v430_v5 = vld [vmem:[#allocation7 + $0xb48] sm:$0xff] }
  0xad   :  { %2660 = vmatpush2.bf16.msra.mxu1 %v3366_v38  ;;  %v3566_v38 = vcombine.low %v342_v23, %v346_v24  ;;  %v434_v6 = vld [vmem:[#allocation7 + $0xb68] sm:$0xff] }
  0xae   :  { %2661 = vmatprep.subr.bf16.mxu1 %v3359_v40  ;;  %v3559_v40 = vcombine.high %v334_v34, %v338_v35  ;;  %v278_v11 = vld [vmem:[#allocation7 + $0x688] sm:$0xff] }
  0xaf   :  { %2675 = vmatpush1.bf16.msra.mxu0 %v3470_v45  ;;  %v3542_v45 = vcombine.low %v318_v30, %v322_v32  ;;  %v282_v12 = vld [vmem:[#allocation7 + $0x6a8] sm:$0xff] }
  0xb0   :  { %2676 = vmatprep.subr.bf16.mxu0 %v3463_v47  ;;  %v3535_v47 = vcombine.high %v310_v41, %v314_v42  ;;  %v422_v13 = vld [vmem:[#allocation7 + $0xb08] sm:$0xff] }
  0xb1   :  { %2662 = vmatpush2.bf16.msra.mxu1 %v3358_v46  ;;  %v3558_v46 = vcombine.low %v334_v34, %v338_v35  ;;  %v426_v14 = vld [vmem:[#allocation7 + $0xb28] sm:$0xff] }
  0xb2   :  { %2713 = vmatprep.subr.bf16.mxu1 %v3607_v48  ;;  %v3551_v48 = vcombine.high %v326_v43, %v330_v44  ;;  %v270_v21 = vld [vmem:[#allocation7 + $0x648] sm:$0xff] }
  0xb3   :  { %2677 = vmatpush1.bf16.msra.mxu0 %v3462_v53  ;;  %v3534_v53 = vcombine.low %v310_v41, %v314_v42  ;;  %v274_v22 = vld [vmem:[#allocation7 + $0x668] sm:$0xff] }
  0xb4   :  { %2664 = vmatmul.mubr.bf16.vlgmr.msra.gmra.mxu1 %v3828_v16  ;;  %2678 = vmatprep.subr.bf16.mxu0 %v3455_v55  ;;  %v3527_v55 = vcombine.high %v302_v49, %v306_v50  ;;  %v414_v23 = vld [vmem:[#allocation7 + $0xac8] sm:$0xff] }
  0xb5   :  { %2714 = vmatpush1.bf16.msra.mxu1 %v3606_v54  ;;  %2745 = vmatprep.mubr.bf16.mxu1 %v3833_v27  ;;  %v3550_v54 = vcombine.low %v326_v43, %v330_v44  ;;  %v418_v24 = vld [vmem:[#allocation7 + $0xae8] sm:$0xff] }
  0xb6   :  { %2715 = vmatprep.subr.bf16.mxu1 %v3599_v56  ;;  %v3671_v56 = vcombine.high %v446_v51, %v450_v52  ;;  %v262_v30 = vld [vmem:[#allocation7 + $0x608] sm:$0xff] }
  0xb7   :  { %2679 = vmatpush1.bf16.msra.mxu0 %v3454_v63  ;;  %v3526_v63 = vcombine.low %v302_v49, %v306_v50  ;;  %v266_v32 = vld [vmem:[#allocation7 + $0x628] sm:$0xff]  ;;  %v127_v49 = vld [vmem:[#allocation7 + $0x1d0] sm:$0xff] }
  0xb8   :  { %2680 = vmatprep.subr.bf16.mxu0 %v3447_v1  ;;  %v3519_v1 = vcombine.high %v294_v57, %v298_v60  ;;  %v406_v34 = vld [vmem:[#allocation7 + $0xa88] sm:$0xff]  ;;  %v131_v50 = vld [vmem:[#allocation7 + $0x1f0] sm:$0xff] }
  0xb9   :  { %2716 = vmatpush1.bf16.msra.mxu1 %v3598_v0  ;;  %v3670_v0 = vcombine.low %v446_v51, %v450_v52  ;;  %v410_v35 = vld [vmem:[#allocation7 + $0xaa8] sm:$0xff] }
  0xba   :  { %2717 = vmatprep.subr.bf16.mxu1 %v3591_v2  ;;  %v3663_v2 = vcombine.high %v438_v61, %v442_v62  ;;  %v454_v41 = vld [vmem:[#allocation7 + $0xc08] sm:$0xff] }
  0xbb   :  { %2681 = vmatpush1.bf16.msra.mxu0 %v3446_v7  ;;  %v3518_v7 = vcombine.low %v294_v57, %v298_v60  ;;  %v458_v42 = vld [vmem:[#allocation7 + $0xc28] sm:$0xff]  ;;  %v255_v57 = vld [vmem:[#allocation7 + $0x5d0] sm:$0xff] }
  0xbc   :  { %2682 = vmatprep.subr.bf16.mxu0 %v3439_v9  ;;  %v3511_v9 = vcombine.high %v286_v3, %v290_v4  ;;  %v398_v43 = vld [vmem:[#allocation7 + $0xa48] sm:$0xff]  ;;  %v259_v60 = vld [vmem:[#allocation7 + $0x5f0] sm:$0xff] }
  0xbd   :  { %2718 = vmatpush1.bf16.msra.mxu1 %v3590_v8  ;;  %v3662_v8 = vcombine.low %v438_v61, %v442_v62  ;;  %v402_v44 = vld [vmem:[#allocation7 + $0xa68] sm:$0xff]  ;;  %v3481_v62 = vcombine.high %v255_v57, %v259_v60 }
  0xbe   :  { %2719 = vmatprep.subr.bf16.mxu1 %v3583_v10  ;;  %v3655_v10 = vcombine.high %v430_v5, %v434_v6  ;;  %v390_v51 = vld [vmem:[#allocation7 + $0xa08] sm:$0xff] }
  0xbf   :  { %2683 = vmatpush1.bf16.msra.mxu0 %v3438_v15  ;;  %v3510_v15 = vcombine.low %v286_v3, %v290_v4  ;;  %v394_v52 = vld [vmem:[#allocation7 + $0xa28] sm:$0xff]  ;;  %v3352_v3 = vcombine.low %v127_v49, %v131_v50  ;;  %v3480_v4 = vcombine.low %v255_v57, %v259_v60 }
  0xc0   :  { %2684 = vmatprep.subr.bf16.mxu0 %v3431_v18  ;;  %v3503_v18 = vcombine.high %v278_v11, %v282_v12  ;;  %v3614_v61 = vcombine.low %v390_v51, %v394_v52 }
  0xc1   :  { %2720 = vmatpush1.bf16.msra.mxu1 %v3582_v17  ;;  %v3654_v17 = vcombine.low %v430_v5, %v434_v6 }
  0xc2   :  { %2721 = vmatprep.subr.bf16.mxu1 %v3575_v20  ;;  %v3647_v20 = vcombine.high %v422_v13, %v426_v14 }
  0xc3   :  { %2685 = vmatpush1.bf16.msra.mxu0 %v3430_v25  ;;  %v3502_v25 = vcombine.low %v278_v11, %v282_v12 }
  0xc4   :  { %2686 = vmatprep.subr.bf16.mxu0 %v3423_v28  ;;  %v3495_v28 = vcombine.high %v270_v21, %v274_v22 }
  0xc5   :  { %2722 = vmatpush1.bf16.msra.mxu1 %v3574_v26  ;;  %v3646_v26 = vcombine.low %v422_v13, %v426_v14 }
  0xc6   :  { %2723 = vmatprep.subr.bf16.mxu1 %v3567_v29  ;;  %v3639_v29 = vcombine.high %v414_v23, %v418_v24 }
  0xc7   :  { %2687 = vmatpush1.bf16.msra.mxu0 %v3422_v36  ;;  %v3494_v36 = vcombine.low %v270_v21, %v274_v22 }
  0xc8   :  { %2688 = vmatprep.subr.bf16.mxu0 %v3543_v39  ;;  %v3487_v39 = vcombine.high %v262_v30, %v266_v32 }
  0xc9   :  { %2724 = vmatpush1.bf16.msra.mxu1 %v3566_v38  ;;  %v3638_v38 = vcombine.low %v414_v23, %v418_v24 }
  0xca   :  { %2725 = vmatprep.subr.bf16.mxu1 %v3559_v40  ;;  %v3631_v40 = vcombine.high %v406_v34, %v410_v35 }
  0xcb   :  { %2689 = vmatpush2.bf16.msra.mxu0 %v3542_v45  ;;  %v3486_v45 = vcombine.low %v262_v30, %v266_v32 }
  0xcc   :  { %2690 = vmatprep.subr.bf16.mxu0 %v3535_v47  ;;  %v3679_v47 = vcombine.high %v454_v41, %v458_v42 }
  0xcd   :  { %2726 = vmatpush1.bf16.msra.mxu1 %v3558_v46  ;;  %v3630_v46 = vcombine.low %v406_v34, %v410_v35 }
  0xce   :  { %2727 = vmatprep.subr.bf16.mxu1 %v3551_v48  ;;  %v3623_v48 = vcombine.high %v398_v43, %v402_v44 }
  0xcf   :  { %2691 = vmatpush2.bf16.msra.mxu0 %v3534_v53  ;;  %v3678_v53 = vcombine.low %v454_v41, %v458_v42 }
  0xd0   :  { %2692 = vmatprep.subr.bf16.mxu0 %v3527_v55  ;;  %v3353_v55 = vcombine.high %v127_v49, %v131_v50 }
  0xd1   :  { %2728 = vmatpush1.bf16.msra.mxu1 %v3550_v54  ;;  %v3622_v54 = vcombine.low %v398_v43, %v402_v44 }
  0xd2   :  { %2729 = vmatprep.subr.bf16.mxu1 %v3671_v56  ;;  %v3615_v56 = vcombine.high %v390_v51, %v394_v52 }
  0xd3   :  { %2693 = vmatpush2.bf16.msra.mxu0 %v3526_v63  ;;  %v119_v63 = vld [vmem:[#allocation7 + $0x190] sm:$0xff] }
  0xd4   :  { %2694 = vmatprep.subr.bf16.mxu0 %v3519_v1  ;;  %v247_v1 = vld [vmem:[#allocation7 + $0x590] sm:$0xff] }
  0xd5   :  { %2730 = vmatpush2.bf16.msra.mxu1 %v3670_v0  ;;  %v123_v0 = vld [vmem:[#allocation7 + $0x1b0] sm:$0xff] }
  0xd6   :  { %2731 = vmatprep.subr.bf16.mxu1 %v3663_v2  ;;  %v251_v2 = vld [vmem:[#allocation7 + $0x5b0] sm:$0xff]  ;;  %v3345_v5 = vcombine.high %v119_v63, %v123_v0  ;;  %v3344_v11 = vcombine.low %v119_v63, %v123_v0 }
  0xd7   :  { %2695 = vmatpush2.bf16.msra.mxu0 %v3518_v7  ;;  %v3473_v6 = vcombine.high %v247_v1, %v251_v2  ;;  %v111_v7 = vld [vmem:[#allocation7 + $0x150] sm:$0xff]  ;;  %v3472_v12 = vcombine.low %v247_v1, %v251_v2 }
  0xd8   :  { %2696 = vmatprep.subr.bf16.mxu0 %v3511_v9  ;;  %v239_v9 = vld [vmem:[#allocation7 + $0x550] sm:$0xff] }
  0xd9   :  { %2732 = vmatpush2.bf16.msra.mxu1 %v3662_v8  ;;  %v115_v8 = vld [vmem:[#allocation7 + $0x170] sm:$0xff] }
  0xda   :  { %2733 = vmatprep.subr.bf16.mxu1 %v3655_v10  ;;  %v243_v10 = vld [vmem:[#allocation7 + $0x570] sm:$0xff]  ;;  %v3337_v13 = vcombine.high %v111_v7, %v115_v8  ;;  %v3336_v21 = vcombine.low %v111_v7, %v115_v8 }
  0xdb   :  { %2697 = vmatpush2.bf16.msra.mxu0 %v3510_v15  ;;  %v3465_v14 = vcombine.high %v239_v9, %v243_v10  ;;  %v103_v15 = vld [vmem:[#allocation7 + $0x110] sm:$0xff]  ;;  %v3464_v22 = vcombine.low %v239_v9, %v243_v10 }
  0xdc   :  { %2698 = vmatprep.subr.bf16.mxu0 %v3503_v18  ;;  %v231_v18 = vld [vmem:[#allocation7 + $0x510] sm:$0xff] }
  0xdd   :  { %2734 = vmatpush2.bf16.msra.mxu1 %v3654_v17  ;;  %v107_v17 = vld [vmem:[#allocation7 + $0x130] sm:$0xff] }
  0xde   :  { %2735 = vmatprep.subr.bf16.mxu1 %v3647_v20  ;;  %v235_v20 = vld [vmem:[#allocation7 + $0x530] sm:$0xff]  ;;  %v3329_v23 = vcombine.high %v103_v15, %v107_v17  ;;  %v3328_v30 = vcombine.low %v103_v15, %v107_v17 }
  0xdf   :  { %2699 = vmatpush2.bf16.msra.mxu0 %v3502_v25  ;;  %v3457_v24 = vcombine.high %v231_v18, %v235_v20  ;;  %v95_v25 = vld [vmem:[#allocation7 + $0xd0] sm:$0xff]  ;;  %v3456_v32 = vcombine.low %v231_v18, %v235_v20 }
  0xe0   :  { %2700 = vmatprep.subr.bf16.mxu0 %v3495_v28  ;;  %v223_v28 = vld [vmem:[#allocation7 + $0x4d0] sm:$0xff] }
  0xe1   :  { %2736 = vmatpush2.bf16.msra.mxu1 %v3646_v26  ;;  %v99_v26 = vld [vmem:[#allocation7 + $0xf0] sm:$0xff] }
  0xe2   :  { %2737 = vmatprep.subr.bf16.mxu1 %v3639_v29  ;;  %v227_v29 = vld [vmem:[#allocation7 + $0x4f0] sm:$0xff]  ;;  %v3321_v34 = vcombine.high %v95_v25, %v99_v26  ;;  %v3320_v41 = vcombine.low %v95_v25, %v99_v26 }
  0xe3   :  { %2701 = vmatpush2.bf16.msra.mxu0 %v3494_v36  ;;  %v3449_v35 = vcombine.high %v223_v28, %v227_v29  ;;  %v87_v36 = vld [vmem:[#allocation7 + $0x90] sm:$0xff]  ;;  %v3448_v42 = vcombine.low %v223_v28, %v227_v29 }
  0xe4   :  { %2702 = vmatprep.subr.bf16.mxu0 %v3487_v39  ;;  %v215_v39 = vld [vmem:[#allocation7 + $0x490] sm:$0xff] }
  0xe5   :  { %2738 = vmatpush2.bf16.msra.mxu1 %v3638_v38  ;;  %v91_v38 = vld [vmem:[#allocation7 + $0xb0] sm:$0xff] }
  0xe6   :  { %2739 = vmatprep.subr.bf16.mxu1 %v3631_v40  ;;  %v219_v40 = vld [vmem:[#allocation7 + $0x4b0] sm:$0xff]  ;;  %v3313_v43 = vcombine.high %v87_v36, %v91_v38  ;;  %v3312_v49 = vcombine.low %v87_v36, %v91_v38 }
  0xe7   :  { %2703 = vmatpush2.bf16.msra.mxu0 %v3486_v45  ;;  %v3441_v44 = vcombine.high %v215_v39, %v219_v40  ;;  %v79_v45 = vld [vmem:[#allocation7 + $0x50] sm:$0xff]  ;;  %v3440_v50 = vcombine.low %v215_v39, %v219_v40 }
  0xe8   :  { %2768 = vmatprep.subr.bf16.mxu0 %v3679_v47  ;;  %v207_v47 = vld [vmem:[#allocation7 + $0x450] sm:$0xff] }
  0xe9   :  { %2740 = vmatpush2.bf16.msra.mxu1 %v3630_v46  ;;  %v83_v46 = vld [vmem:[#allocation7 + $0x70] sm:$0xff] }
  0xea   :  { %2741 = vmatprep.subr.bf16.mxu1 %v3623_v48  ;;  %2705 = vmatmul.mubr.bf16.vlgmr.msra.gmra.mxu0 %v3830_v19  ;;  %v211_v48 = vld [vmem:[#allocation7 + $0x470] sm:$0xff]  ;;  %v3305_v51 = vcombine.high %v79_v45, %v83_v46  ;;  %v3304_v57 = vcombine.low %v79_v45, %v83_v46 }
  0xeb   :  { %2769 = vmatpush1.bf16.msra.mxu0 %v3678_v53  ;;  %2786 = vmatprep.mubr.bf16.mxu0 %v3786_v31  ;;  %v3433_v52 = vcombine.high %v207_v47, %v211_v48  ;;  %v71_v53 = vld [vmem:[#allocation7 + $0x10] sm:$0xff]  ;;  %v3432_v60 = vcombine.low %v207_v47, %v211_v48 }
  0xec   :  { %2795 = vmatprep.subr.bf16.mxu0 %v3353_v55  ;;  %v199_v55 = vld [vmem:[#allocation7 + $0x410] sm:$0xff] }
  0xed   :  { %2742 = vmatpush2.bf16.msra.mxu1 %v3622_v54  ;;  %v75_v54 = vld [vmem:[#allocation7 + $0x30] sm:$0xff] }
  0xee   :  { %2743 = vmatprep.subr.bf16.mxu1 %v3615_v56  ;;  %v203_v56 = vld [vmem:[#allocation7 + $0x430] sm:$0xff] }
  0xef   :  { %v191_v63 = vld [vmem:[#allocation7 + $0x3d0] sm:$0xff] }
  0xf0   :  { %v195_v0 = vld [vmem:[#allocation7 + $0x3f0] sm:$0xff] }
  0xf1   :  { %2744 = vmatpush2.bf16.msra.mxu1 %v3614_v61  ;;  %v3297_v61 = vcombine.high %v71_v53, %v75_v54  ;;  %v319_v1 = vld [vmem:[#allocation7 + $0x7d0] sm:$0xff] }
  0xf2   :  { %2836 = vmatprep.subr.bf16.mxu1 %v3481_v62  ;;  %3685 = vmatmul.mubr.msk.bf16.vlgmr.msra.gmra.mxu0 %vm2463_vm0, %v3838_v37  ;;  %v3425_v62 = vcombine.high %v199_v55, %v203_v56  ;;  %v323_v2 = vld [vmem:[#allocation7 + $0x7f0] sm:$0xff] }
  0xf3   :  { %2796 = vmatpush1.bf16.msra.mxu0 %v3352_v3  ;;  %2827 = vmatprep.mubr.bf16.mxu0 %v3822_v58  ;;  %v3296_v3 = vcombine.low %v71_v53, %v75_v54  ;;  %v183_v7 = vld [vmem:[#allocation7 + $0x390] sm:$0xff] }
  0xf4   :  { %2746 = vmatmul.mubr.bf16.vlgmr.msra.gmra.mxu1 %v3843_v33  ;;  %2797 = vmatprep.subr.bf16.mxu0 %v3345_v5  ;;  %v3417_v5 = vcombine.high %v191_v63, %v195_v0  ;;  %v187_v8 = vld [vmem:[#allocation7 + $0x3b0] sm:$0xff] }
  0xf5   :  { %2837 = vmatpush1.bf16.msra.mxu1 %v3480_v4  ;;  %2868 = vmatprep.mubr.bf16.mxu1 %v3824_v59  ;;  %v3424_v4 = vcombine.low %v199_v55, %v203_v56  ;;  %v311_v9 = vld [vmem:[#allocation7 + $0x790] sm:$0xff] }
  0xf6   :  { %2838 = vmatprep.subr.bf16.mxu1 %v3473_v6  ;;  %v3545_v6 = vcombine.high %v319_v1, %v323_v2  ;;  %v315_v10 = vld [vmem:[#allocation7 + $0x7b0] sm:$0xff] }
  0xf7   :  { %2798 = vmatpush1.bf16.msra.mxu0 %v3344_v11  ;;  %v3416_v11 = vcombine.low %v191_v63, %v195_v0  ;;  %v175_v15 = vld [vmem:[#allocation7 + $0x350] sm:$0xff] }
  0xf8   :  { %2799 = vmatprep.subr.bf16.mxu0 %v3337_v13  ;;  %v3409_v13 = vcombine.high %v183_v7, %v187_v8  ;;  %v179_v17 = vld [vmem:[#allocation7 + $0x370] sm:$0xff] }
  0xf9   :  { %2839 = vmatpush1.bf16.msra.mxu1 %v3472_v12  ;;  %v3544_v12 = vcombine.low %v319_v1, %v323_v2  ;;  %v303_v18 = vld [vmem:[#allocation7 + $0x750] sm:$0xff] }
  0xfa   :  { %2840 = vmatprep.subr.bf16.mxu1 %v3465_v14  ;;  %v3537_v14 = vcombine.high %v311_v9, %v315_v10  ;;  %v307_v20 = vld [vmem:[#allocation7 + $0x770] sm:$0xff] }
  0xfb   :  { %2800 = vmatpush1.bf16.msra.mxu0 %v3336_v21  ;;  %v3408_v21 = vcombine.low %v183_v7, %v187_v8  ;;  %v167_v25 = vld [vmem:[#allocation7 + $0x310] sm:$0xff] }
  0xfc   :  { %2801 = vmatprep.subr.bf16.mxu0 %v3329_v23  ;;  %v3401_v23 = vcombine.high %v175_v15, %v179_v17  ;;  %v171_v26 = vld [vmem:[#allocation7 + $0x330] sm:$0xff] }
  0xfd   :  { %2841 = vmatpush1.bf16.msra.mxu1 %v3464_v22  ;;  %v3536_v22 = vcombine.low %v311_v9, %v315_v10  ;;  %v295_v28 = vld [vmem:[#allocation7 + $0x710] sm:$0xff] }
  0xfe   :  { %2842 = vmatprep.subr.bf16.mxu1 %v3457_v24  ;;  %v3529_v24 = vcombine.high %v303_v18, %v307_v20  ;;  %v299_v29 = vld [vmem:[#allocation7 + $0x730] sm:$0xff] }
  0xff   :  { %2802 = vmatpush1.bf16.msra.mxu0 %v3328_v30  ;;  %v3400_v30 = vcombine.low %v175_v15, %v179_v17  ;;  %v159_v36 = vld [vmem:[#allocation7 + $0x2d0] sm:$0xff] }
 0x100   :  { %2803 = vmatprep.subr.bf16.mxu0 %v3321_v34  ;;  %v3393_v34 = vcombine.high %v167_v25, %v171_v26  ;;  %v163_v38 = vld [vmem:[#allocation7 + $0x2f0] sm:$0xff] }
 0x101   :  { %2843 = vmatpush1.bf16.msra.mxu1 %v3456_v32  ;;  %v3528_v32 = vcombine.low %v303_v18, %v307_v20  ;;  %v287_v39 = vld [vmem:[#allocation7 + $0x6d0] sm:$0xff] }
 0x102   :  { %2844 = vmatprep.subr.bf16.mxu1 %v3449_v35  ;;  %v3521_v35 = vcombine.high %v295_v28, %v299_v29  ;;  %v291_v40 = vld [vmem:[#allocation7 + $0x6f0] sm:$0xff] }
 0x103   :  { %2804 = vmatpush1.bf16.msra.mxu0 %v3320_v41  ;;  %v3392_v41 = vcombine.low %v167_v25, %v171_v26  ;;  %v151_v45 = vld [vmem:[#allocation7 + $0x290] sm:$0xff]  ;;  %v132_v25 = vld [vmem:[#allocation7 + $0x1f8] sm:$0xff] }
 0x104   :  { %2805 = vmatprep.subr.bf16.mxu0 %v3313_v43  ;;  %v3385_v43 = vcombine.high %v159_v36, %v163_v38  ;;  %v155_v46 = vld [vmem:[#allocation7 + $0x2b0] sm:$0xff] }
 0x105   :  { %2845 = vmatpush1.bf16.msra.mxu1 %v3448_v42  ;;  %v3520_v42 = vcombine.low %v295_v28, %v299_v29  ;;  %v279_v47 = vld [vmem:[#allocation7 + $0x690] sm:$0xff] }
 0x106   :  { %2846 = vmatprep.subr.bf16.mxu1 %v3441_v44  ;;  %v3513_v44 = vcombine.high %v287_v39, %v291_v40  ;;  %v283_v48 = vld [vmem:[#allocation7 + $0x6b0] sm:$0xff] }
 0x107   :  { %2806 = vmatpush1.bf16.msra.mxu0 %v3312_v49  ;;  %v3384_v49 = vcombine.low %v159_v36, %v163_v38  ;;  %v143_v53 = vld [vmem:[#allocation7 + $0x250] sm:$0xff] }
 0x108   :  { %2807 = vmatprep.subr.bf16.mxu0 %v3305_v51  ;;  %v3377_v51 = vcombine.high %v151_v45, %v155_v46  ;;  %v147_v54 = vld [vmem:[#allocation7 + $0x270] sm:$0xff] }
 0x109   :  { %2847 = vmatpush1.bf16.msra.mxu1 %v3440_v50  ;;  %v3512_v50 = vcombine.low %v287_v39, %v291_v40  ;;  %v271_v55 = vld [vmem:[#allocation7 + $0x650] sm:$0xff] }
 0x10a   :  { %2848 = vmatprep.subr.bf16.mxu1 %v3433_v52  ;;  %v3505_v52 = vcombine.high %v279_v47, %v283_v48  ;;  %v275_v56 = vld [vmem:[#allocation7 + $0x670] sm:$0xff] }
 0x10b   :  { %2808 = vmatpush1.bf16.msra.mxu0 %v3304_v57  ;;  %v3376_v57 = vcombine.low %v151_v45, %v155_v46  ;;  %v135_v63 = vld [vmem:[#allocation7 + $0x210] sm:$0xff]  ;;  %v120_v45 = vld [vmem:[#allocation7 + $0x198] sm:$0xff] }
 0x10c   :  { %2809 = vmatprep.subr.bf16.mxu0 %v3297_v61  ;;  %v3369_v61 = vcombine.high %v143_v53, %v147_v54  ;;  %v139_v0 = vld [vmem:[#allocation7 + $0x230] sm:$0xff]  ;;  %v124_v46 = vld [vmem:[#allocation7 + $0x1b8] sm:$0xff] }
 0x10d   :  { %2849 = vmatpush1.bf16.msra.mxu1 %v3432_v60  ;;  %v3504_v60 = vcombine.low %v279_v47, %v283_v48  ;;  %v263_v1 = vld [vmem:[#allocation7 + $0x610] sm:$0xff] }
 0x10e   :  { %2850 = vmatprep.subr.bf16.mxu1 %v3425_v62  ;;  %v3497_v62 = vcombine.high %v271_v55, %v275_v56  ;;  %v267_v2 = vld [vmem:[#allocation7 + $0x630] sm:$0xff] }
 0x10f   :  { %2810 = vmatpush1.bf16.msra.mxu0 %v3296_v3  ;;  %v3368_v3 = vcombine.low %v143_v53, %v147_v54  ;;  %v383_v7 = vld [vmem:[#allocation7 + $0x9d0] sm:$0xff]  ;;  %v3488_v15 = vcombine.low %v263_v1, %v267_v2 }
 0x110   :  { %2811 = vmatprep.subr.bf16.mxu0 %v3417_v5  ;;  %v3361_v5 = vcombine.high %v135_v63, %v139_v0  ;;  %v387_v8 = vld [vmem:[#allocation7 + $0x9f0] sm:$0xff] }
 0x111   :  { %2851 = vmatpush1.bf16.msra.mxu1 %v3424_v4  ;;  %v3496_v4 = vcombine.low %v271_v55, %v275_v56  ;;  %v455_v10 = vld [vmem:[#allocation7 + $0xc10] sm:$0xff]  ;;  %v3609_v17 = vcombine.high %v383_v7, %v387_v8  ;;  %v3608_v28 = vcombine.low %v383_v7, %v387_v8  ;;  %v463_v55 = vlaneseq  ;;  %v112_v56 = vld [vmem:[#allocation7 + $0x158] sm:$0xff] }
 0x112   :  { %2852 = vmatprep.subr.bf16.mxu1 %v3545_v6  ;;  %v3489_v6 = vcombine.high %v263_v1, %v267_v2  ;;  %v367_v36 = vld [vmem:[#allocation7 + $0x950] sm:$0xff] }
 0x113   :  { %2812 = vmatpush2.bf16.msra.mxu0 %v3416_v11  ;;  %v459_v11 = vld [vmem:[#allocation7 + $0xc30] sm:$0xff]  ;;  %v3875_v2 = vshrl.u32 %v463_v55, 7 }
 0x114   :  { %2813 = vmatprep.subr.bf16.mxu0 %v3409_v13  ;;  %v3360_v13 = vcombine.low %v135_v63, %v139_v0  ;;  %v3681_v20 = vcombine.high %v455_v10, %v459_v11  ;;  %v371_v38 = vld [vmem:[#allocation7 + $0x970] sm:$0xff] }
 0x115   :  { %2853 = vmatpush2.bf16.msra.mxu1 %v3544_v12  ;;  %v3592_v48 = vcombine.low %v367_v36, %v371_v38  ;;  %v351_v53 = vld [vmem:[#allocation7 + $0x8d0] sm:$0xff] }
 0x116   :  { %2854 = vmatprep.subr.bf16.mxu1 %v3537_v14  ;;  %v355_v54 = vld [vmem:[#allocation7 + $0x8f0] sm:$0xff] }
 0x117   :  { %2814 = vmatpush2.bf16.msra.mxu0 %v3408_v21  ;;  %v375_v21 = vld [vmem:[#allocation7 + $0x990] sm:$0xff] }
 0x118   :  { %2815 = vmatprep.subr.bf16.mxu0 %v3401_v23  ;;  %v343_v0 = vld [vmem:[#allocation7 + $0x890] sm:$0xff] }
 0x119   :  { %2855 = vmatpush2.bf16.msra.mxu1 %v3536_v22  ;;  %v379_v22 = vld [vmem:[#allocation7 + $0x9b0] sm:$0xff] }
 0x11a   :  { %2856 = vmatprep.subr.bf16.mxu1 %v3529_v24  ;;  %v128_v24 = vld [vmem:[#allocation7 + $0x1d8] sm:$0xff]  ;;  %v3600_v40 = vcombine.low %v375_v21, %v379_v22  ;;  %v347_v1 = vld [vmem:[#allocation7 + $0x8b0] sm:$0xff] }
 0x11b   :  { %2816 = vmatpush2.bf16.msra.mxu0 %v3400_v30  ;;  %v3680_v30 = vcombine.low %v455_v10, %v459_v11  ;;  %v3569_v8 = vcombine.high %v343_v0, %v347_v1  ;;  %v3880_v10 = vmul.u32 1024, %v3875_v2 }
 0x11c   :  { %2817 = vmatprep.subr.bf16.mxu0 %v3393_v34 }
 0x11d   :  { %2857 = vmatpush2.bf16.msra.mxu1 %v3528_v32  ;;  %v3601_v32 = vcombine.high %v375_v21, %v379_v22  ;;  %v3568_v21 = vcombine.low %v343_v0, %v347_v1  ;;  %v431_v1 = vld [vmem:[#allocation7 + $0xb50] sm:$0xff] }
 0x11e   :  { %2858 = vmatprep.subr.bf16.mxu1 %v3521_v35  ;;  %v3355_v35 = vcombine.high %v128_v24, %v132_v25 }
 0x11f   :  { %2818 = vmatpush2.bf16.msra.mxu0 %v3392_v41  ;;  %v3593_v41 = vcombine.high %v367_v36, %v371_v38 }
 0x120   :  { %2819 = vmatprep.subr.bf16.mxu0 %v3385_v43  ;;  %v359_v43 = vld [vmem:[#allocation7 + $0x910] sm:$0xff] }
 0x121   :  { %2859 = vmatpush2.bf16.msra.mxu1 %v3520_v42 }
 0x122   :  { %2860 = vmatprep.subr.bf16.mxu1 %v3513_v44  ;;  %v363_v44 = vld [vmem:[#allocation7 + $0x930] sm:$0xff] }
 0x123   :  { %2820 = vmatpush2.bf16.msra.mxu0 %v3384_v49  ;;  %v3354_v49 = vcombine.low %v128_v24, %v132_v25 }
 0x124   :  { %2821 = vmatprep.subr.bf16.mxu0 %v3377_v51 }
 0x125   :  { %2861 = vmatpush2.bf16.msra.mxu1 %v3512_v50  ;;  %v3585_v50 = vcombine.high %v359_v43, %v363_v44 }
 0x126   :  { %2862 = vmatprep.subr.bf16.mxu1 %v3505_v52  ;;  %v3347_v52 = vcombine.high %v120_v45, %v124_v46 }
 0x127   :  { %2822 = vmatpush2.bf16.msra.mxu0 %v3376_v57  ;;  %v116_v57 = vld [vmem:[#allocation7 + $0x178] sm:$0xff] }
 0x128   :  { %2823 = vmatprep.subr.bf16.mxu0 %v3369_v61  ;;  %v3346_v61 = vcombine.low %v120_v45, %v124_v46  ;;  %v3339_v63 = vcombine.high %v112_v56, %v116_v57  ;;  %v3338_v7 = vcombine.low %v112_v56, %v116_v57  ;;  %v80_v45 = vld [vmem:[#allocation7 + $0x58] sm:$0xff] }
 0x129   :  { %2863 = vmatpush2.bf16.msra.mxu1 %v3504_v60  ;;  %v3584_v60 = vcombine.low %v359_v43, %v363_v44  ;;  %v447_v43 = vld [vmem:[#allocation7 + $0xbd0] sm:$0xff]  ;;  %v84_v46 = vld [vmem:[#allocation7 + $0x78] sm:$0xff] }
 0x12a   :  { %2864 = vmatprep.subr.bf16.mxu1 %v3497_v62  ;;  %v3856_v9 = vpop.f32.mrf.mxu0  ;;  %v3577_v62 = vcombine.high %v351_v53, %v355_v54  ;;  %v451_v44 = vld [vmem:[#allocation7 + $0xbf0] sm:$0xff]  ;;  %v76_v56 = vld [vmem:[#allocation7 + $0x38] sm:$0xff] }
 0x12b   :  { %2824 = vmatpush2.bf16.msra.mxu0 %v3368_v3  ;;  %v104_v3 = vld [vmem:[#allocation7 + $0x118] sm:$0xff] }
 0x12c   :  { %v3858_v12 = vpop.f32.mrf.mxu1  ;;  %v3860_v14 = vpop.f32.mrf.mxu0  ;;  %2825 = vmatprep.subr.bf16.mxu0 %v3361_v5  ;;  %v3877_v5 = vand.u32 127, %v463_v55  ;;  %v72_v55 = vld [vmem:[#allocation7 + $0x18] sm:$0xff] }
 0x12d   :  { %2865 = vmatpush2.bf16.msra.mxu1 %v3496_v4  ;;  %v108_v4 = vld [vmem:[#allocation7 + $0x138] sm:$0xff]  ;;  %v3299_v0 = vcombine.high %v72_v55, %v76_v56 }
 0x12e   :  { %v3862_v18 = vpop.f32.mrf.mxu1  ;;  %2866 = vmatprep.subr.bf16.mxu1 %v3489_v6  ;;  %v2505_v23 = vpop.f32.mrf.mxu0  ;;  %v3576_v6 = vcombine.low %v351_v53, %v355_v54  ;;  %v3331_v11 = vcombine.high %v104_v3, %v108_v4  ;;  %v3330_v22 = vcombine.low %v104_v3, %v108_v4  ;;  %v3145_v24 = vadd.s32 %v3880_v10, %v3877_v5  ;;  %v439_v53 = vld [vmem:[#allocation7 + $0xb90] sm:$0xff]  ;;  %v192_v4 = vld [vmem:[#allocation7 + $0x3d8] sm:$0xff] }
 0x12f   :  { %2826 = vmatpush2.bf16.msra.mxu0 %v3360_v13  ;;  %v335_v13 = vld [vmem:[#allocation7 + $0x850] sm:$0xff] }
 0x130   :  { %v2546_v26 = vpop.f32.mrf.mxu1  ;;  %v2506_v29 = vpop.f32.mrf.mxu0  ;;  %2877 = vmatprep.subr.bf16.mxu0 %v3609_v17  ;;  %v100_v17 = vld [vmem:[#allocation7 + $0xf8] sm:$0xff]  ;;  %v443_v54 = vld [vmem:[#allocation7 + $0xbb0] sm:$0xff] }
 0x131   :  { %2867 = vmatpush2.bf16.msra.mxu1 %v3488_v15  ;;  %v339_v15 = vld [vmem:[#allocation7 + $0x870] sm:$0xff]  ;;  %v3888_v29 = vstv %s3162_s5 }
 0x132   :  { %v2547_v34 = vpop.f32.mrf.mxu1  ;;  %2932 = vmatprep.subr.bf16.mxu1 %v3681_v20  ;;  %2828 = vmatmul.mubr.bf16.vlgmr.msra.gmra.mxu0 %v3828_v16  ;;  %v3137_v20 = vadd.s32 128, %v3877_v5  ;;  %v3561_v23 = vcombine.high %v335_v13, %v339_v15  ;;  %v327_v26 = vld [vmem:[#allocation7 + $0x810] sm:$0xff] }
 0x133   :  { %2878 = vmatpush1.bf16.msra.mxu0 %v3608_v28  ;;  %2909 = vmatprep.mubr.bf16.mxu0 %v3833_v27  ;;  %v331_v28 = vld [vmem:[#allocation7 + $0x830] sm:$0xff] }
 0x134   :  { %2869 = vmatmul.mubr.bf16.vlgmr.msra.gmra.mxu1 %v3830_v19  ;;  %v3866_v39 = vpop.f32.mrf.mxu1  ;;  %2879 = vmatprep.subr.bf16.mxu0 %v3601_v32  ;;  %v92_v32 = vld [vmem:[#allocation7 + $0xb8] sm:$0xff]  ;;  %v3146_v34 = vadd.s32 %v3880_v10, %v3137_v20  ;;  %v3553_v38 = vcombine.high %v327_v26, %v331_v28  ;;  %v435_v3 = vld [vmem:[#allocation7 + $0xb70] sm:$0xff] }
 0x135   :  { %2933 = vmatpush1.bf16.msra.mxu1 %v3680_v30  ;;  %2950 = vmatprep.mubr.bf16.mxu1 %v3786_v31  ;;  %v88_v30 = vld [vmem:[#allocation7 + $0x98] sm:$0xff]  ;;  %v427_v20 = vld [vmem:[#allocation7 + $0xb30] sm:$0xff] }
 0x136   :  { %v3868_v42 = vpop.f32.mrf.mxu1  ;;  %2959 = vmatprep.subr.bf16.mxu1 %v3355_v35  ;;  %v3560_v35 = vcombine.low %v335_v13, %v339_v15  ;;  %v3657_v13 = vcombine.high %v431_v1, %v435_v3 }
 0x137   :  { %2880 = vmatpush1.bf16.msra.mxu0 %v3600_v40  ;;  %v3164_v40 = vadd.s32 %v3888_v29, %v3145_v24  ;;  %v3656_v24 = vcombine.low %v431_v1, %v435_v3  ;;  %v164_v1 = vld [vmem:[#allocation7 + $0x2f8] sm:$0xff] }
 0x138   :  { %v2628_v47 = vpop.f32.mrf.mxu1  ;;  %2881 = vmatprep.subr.bf16.mxu0 %v3593_v41  ;;  %v3315_v41 = vcombine.high %v88_v30, %v92_v32 }
 0x139   :  { %v3165_v47 = vadd.s32 %v3888_v29, %v3146_v34  ;;  %v419_v34 = vld [vmem:[#allocation7 + $0xaf0] sm:$0xff] }
 0x13a   :  { %v2629_v51 = vpop.f32.mrf.mxu1 }
 0x13b   :  { %2882 = vmatpush1.bf16.msra.mxu0 %v3592_v48  ;;  %v3552_v48 = vcombine.low %v327_v26, %v331_v28  ;;  %v3172_v51 = vshrl.u32 %v3164_v40, 16  ;;  %v3173_v57 = vshrl.u32 %v3165_v47, 16 }
 0x13c   :  { %3686 = vmatmul.mubr.msk.bf16.vlgmr.msra.gmra.mxu1 %vm2463_vm0, %v3838_v37  ;;  %2883 = vmatprep.subr.bf16.mxu0 %v3585_v50  ;;  %v3673_v50 = vcombine.high %v447_v43, %v451_v44 }
 0x13d   :  { %2960 = vmatpush1.bf16.msra.mxu1 %v3354_v49  ;;  %2991 = vmatprep.mubr.bf16.mxu1 %v3822_v58  ;;  %v96_v58 = vld [vmem:[#allocation7 + $0xd8] sm:$0xff]  ;;  %v3314_v49 = vcombine.low %v88_v30, %v92_v32  ;;  %v415_v32 = vld [vmem:[#allocation7 + $0xad0] sm:$0xff] }
 0x13e   :  { %2961 = vmatprep.subr.bf16.mxu1 %v3347_v52  ;;  %v3323_v25 = vcombine.high %v96_v58, %v100_v17  ;;  %v3322_v36 = vcombine.low %v96_v58, %v100_v17  ;;  %v3307_v52 = vcombine.high %v80_v45, %v84_v46  ;;  %v423_v17 = vld [vmem:[#allocation7 + $0xb10] sm:$0xff] }
 0x13f   :  { %2884 = vmatpush1.bf16.msra.mxu0 %v3584_v60  ;;  %v3672_v60 = vcombine.low %v447_v43, %v451_v44  ;;  %v3649_v26 = vcombine.high %v423_v17, %v427_v20  ;;  %v3641_v43 = vcombine.high %v415_v32, %v419_v34 }
 0x140   :  { %2885 = vmatprep.subr.bf16.mxu0 %v3577_v62  ;;  %v3665_v62 = vcombine.high %v439_v53, %v443_v54 }
 0x141   :  { %2962 = vmatpush1.bf16.msra.mxu1 %v3346_v61  ;;  %v3306_v61 = vcombine.low %v80_v45, %v84_v46  ;;  %v465_v45 = vsub.s32 0, %v3875_v2 }
 0x142   :  { %2963 = vmatprep.subr.bf16.mxu1 %v3339_v63  ;;  %v3180_v63 = vxor.u32 %v3172_v51, %v3164_v40  ;;  %v3648_v40 = vcombine.low %v423_v17, %v427_v20  ;;  %v172_v51 = vld [vmem:[#allocation7 + $0x338] sm:$0xff]  ;;  %v395_v17 = vld [vmem:[#allocation7 + $0xa30] sm:$0xff] }
 0x143   :  { %2886 = vmatpush1.bf16.msra.mxu0 %v3576_v6  ;;  %v196_v6 = vld [vmem:[#allocation7 + $0x3f8] sm:$0xff] }
 0x144   :  { %2887 = vmatprep.subr.bf16.mxu0 %v3569_v8  ;;  %v3664_v8 = vcombine.low %v439_v53, %v443_v54  ;;  %v3188_v15 = vmul.u32 569420461, %v3180_v63  ;;  %v3419_v58 = vcombine.high %v192_v4, %v196_v6  ;;  %v469_v53 = vsub.s32 1, %v3875_v2  ;;  %v403_v63 = vld [vmem:[#allocation7 + $0xa70] sm:$0xff] }
 0x145   :  { %2964 = vmatpush1.bf16.msra.mxu1 %v3338_v7  ;;  %v3181_v7 = vxor.u32 %v3173_v57, %v3165_v47  ;;  %v407_v47 = vld [vmem:[#allocation7 + $0xa90] sm:$0xff]  ;;  %v3640_v54 = vcombine.low %v415_v32, %v419_v34  ;;  %v256_v32 = vld [vmem:[#allocation7 + $0x5d8] sm:$0xff] }
 0x146   :  { %2965 = vmatprep.subr.bf16.mxu1 %v3331_v11  ;;  %v3298_v11 = vcombine.low %v72_v55, %v76_v56  ;;  %v3196_v28 = vshrl.u32 %v3188_v15, 15  ;;  %v260_v34 = vld [vmem:[#allocation7 + $0x5f8] sm:$0xff] }
 0x147   :  { %2888 = vmatpush1.bf16.msra.mxu0 %v3568_v21  ;;  %v184_v21 = vld [vmem:[#allocation7 + $0x398] sm:$0xff] }
 0x148   :  { %2889 = vmatprep.subr.bf16.mxu0 %v3561_v23  ;;  %v3189_v23 = vmul.u32 569420461, %v3181_v7  ;;  %v3204_v44 = vxor.u32 %v3196_v28, %v3188_v15 }
 0x149   :  { %2966 = vmatpush1.bf16.msra.mxu1 %v3330_v22  ;;  %v188_v22 = vld [vmem:[#allocation7 + $0x3b8] sm:$0xff] }
 0x14a   :  { %2967 = vmatprep.subr.bf16.mxu1 %v3323_v25  ;;  %v3418_v25 = vcombine.low %v192_v4, %v196_v6  ;;  %v3411_v30 = vcombine.high %v184_v21, %v188_v22  ;;  %v3212_v57 = vmul.u32 1935289751, %v3204_v44 }
 0x14b   :  { %2890 = vmatpush1.bf16.msra.mxu0 %v3560_v35  ;;  %v176_v35 = vld [vmem:[#allocation7 + $0x358] sm:$0xff] }
 0x14c   :  { %2891 = vmatprep.subr.bf16.mxu0 %v3553_v38  ;;  %v3197_v38 = vshrl.u32 %v3189_v23, 15 }
 0x14d   :  { %2968 = vmatpush1.bf16.msra.mxu1 %v3322_v36  ;;  %v180_v36 = vld [vmem:[#allocation7 + $0x378] sm:$0xff] }
 0x14e   :  { %2969 = vmatprep.subr.bf16.mxu1 %v3315_v41  ;;  %v3410_v41 = vcombine.low %v184_v21, %v188_v22  ;;  %v3403_v46 = vcombine.high %v176_v35, %v180_v36  ;;  %v3402_v55 = vcombine.low %v176_v35, %v180_v36  ;;  %v152_v21 = vld [vmem:[#allocation7 + $0x298] sm:$0xff] }
 0x14f   :  { %2892 = vmatpush1.bf16.msra.mxu0 %v3552_v48  ;;  %v411_v48 = vld [vmem:[#allocation7 + $0xab0] sm:$0xff]  ;;  %v156_v22 = vld [vmem:[#allocation7 + $0x2b8] sm:$0xff] }
 0x150   :  { %2893 = vmatprep.subr.bf16.mxu0 %v3673_v50  ;;  %v168_v50 = vld [vmem:[#allocation7 + $0x318] sm:$0xff]  ;;  %v3633_v56 = vcombine.high %v407_v47, %v411_v48  ;;  %v3632_v6 = vcombine.low %v407_v47, %v411_v48  ;;  %v3483_v47 = vcombine.high %v256_v32, %v260_v34 }
 0x151   :  { %2970 = vmatpush1.bf16.msra.mxu1 %v3314_v49  ;;  %v3894_v49 = vld [vmem:[#allocation9] sm:$0xff]  ;;  %v3394_v7 = vcombine.low %v168_v50, %v172_v51 }
 0x152   :  { %2971 = vmatprep.subr.bf16.mxu1 %v3307_v52  ;;  %v3205_v52 = vxor.u32 %v3197_v38, %v3189_v23  ;;  %v470_v4 = vrot.slane %v3894_v49, %v469_v53  ;;  %v144_v38 = vld [vmem:[#allocation7 + $0x258] sm:$0xff] }
 0x153   :  { %2894 = vmatpush2.bf16.msra.mxu0 %v3672_v60  ;;  %v466_v60 = vrot.slane %v3894_v49, %v465_v45 }
 0x154   :  { %2895 = vmatprep.subr.bf16.mxu0 %v3665_v62  ;;  %v399_v62 = vld [vmem:[#allocation7 + $0xa50] sm:$0xff]  ;;  %v3213_v3 = vmul.u32 1935289751, %v3205_v52  ;;  %v2504_v23 = vadd.f32 %v3860_v14, %v470_v4  ;;  %v252_v52 = vld [vmem:[#allocation7 + $0x5b8] sm:$0xff] }
 0x155   :  { %2972 = vmatpush1.bf16.msra.mxu1 %v3306_v61  ;;  %v3395_v61 = vcombine.high %v168_v50, %v172_v51  ;;  %v248_v51 = vld [vmem:[#allocation7 + $0x598] sm:$0xff] }
 0x156   :  { %2973 = vmatprep.subr.bf16.mxu1 %v3299_v0  ;;  %v160_v0 = vld [vmem:[#allocation7 + $0x2d8] sm:$0xff]  ;;  %v3221_v20 = vshrl.u32 %v3213_v3, 15 }
 0x157   :  { %2896 = vmatpush2.bf16.msra.mxu0 %v3664_v8  ;;  %v3625_v8 = vcombine.high %v399_v62, %v403_v63  ;;  %v3387_v15 = vcombine.high %v160_v0, %v164_v1  ;;  %v240_v4 = vld [vmem:[#allocation7 + $0x558] sm:$0xff] }
 0x158   :  { %2897 = vmatprep.subr.bf16.mxu0 %v3657_v13  ;;  %v2502_v13 = vadd.f32 %v3856_v9, %v466_v60  ;;  %v3379_v9 = vcombine.high %v152_v21, %v156_v22  ;;  %v3229_v36 = vxor.u32 %v3221_v20, %v3213_v3  ;;  %v3482_v60 = vcombine.low %v256_v32, %v260_v34 }
 0x159   :  { %2974 = vmatpush1.bf16.msra.mxu1 %v3298_v11  ;;  %v3220_v11 = vshrl.u32 %v3212_v57, 15 }
 0x15a   :  { %2975 = vmatprep.subr.bf16.mxu1 %v3419_v58  ;;  %v391_v58 = vld [vmem:[#allocation7 + $0xa10] sm:$0xff]  ;;  %v3237_v53 = vshrl.u32 %v3229_v36, 31  ;;  %v224_v36 = vld [vmem:[#allocation7 + $0x4d8] sm:$0xff] }
 0x15b   :  { %2898 = vmatpush2.bf16.msra.mxu0 %v3656_v24  ;;  %v3624_v24 = vcombine.low %v399_v62, %v403_v63  ;;  %v3617_v28 = vcombine.high %v391_v58, %v395_v17  ;;  %v3475_v63 = vcombine.high %v248_v51, %v252_v52 }
 0x15c   :  { %2899 = vmatprep.subr.bf16.mxu0 %v3649_v26  ;;  %v3228_v26 = vxor.u32 %v3220_v11, %v3212_v57  ;;  %vm3909_vm2 = vcmp.eq.s32.totalorder %v3237_v53, 0  ;;  %v208_v53 = vld [vmem:[#allocation7 + $0x458] sm:$0xff] }
 0x15d   :  { %2976 = vmatpush2.bf16.msra.mxu1 %v3418_v25  ;;  %v3386_v25 = vcombine.low %v160_v0, %v164_v1 }
 0x15e   :  { %2977 = vmatprep.subr.bf16.mxu1 %v3411_v30  ;;  %v2543_v30 = vadd.f32 %v3858_v12, %v2502_v13  ;;  %v3236_v44 = vshrl.u32 %v3228_v26, 31  ;;  %v376_v26 = vld [vmem:[#allocation7 + $0x998] sm:$0xff] }
 0x15f   :  { %2900 = vmatpush2.bf16.msra.mxu0 %v3648_v40  ;;  %v148_v40 = vld [vmem:[#allocation7 + $0x278] sm:$0xff] }
 0x160   :  { %2901 = vmatprep.subr.bf16.mxu0 %v3641_v43  ;;  %v3616_v43 = vcombine.low %v391_v58, %v395_v17  ;;  %v3371_v50 = vcombine.high %v144_v38, %v148_v40  ;;  %vm3905_vm1 = vcmp.eq.s32.totalorder %v3236_v44, 0  ;;  %v3370_v62 = vcombine.low %v144_v38, %v148_v40  ;;  %v228_v38 = vld [vmem:[#allocation7 + $0x4f8] sm:$0xff] }
 0x161   :  { %2978 = vmatpush2.bf16.msra.mxu1 %v3410_v41  ;;  %v2545_v41 = vadd.f32 %v3862_v18, %v2504_v23  ;;  %v140_v18 = vld [vmem:[#allocation7 + $0x238] sm:$0xff]  ;;  %v3474_v58 = vcombine.low %v248_v51, %v252_v52  ;;  %v3451_v44 = vcombine.high %v224_v36, %v228_v38 }
 0x162   :  { %2979 = vmatprep.subr.bf16.mxu1 %v3403_v46  ;;  %v3378_v46 = vcombine.low %v152_v21, %v156_v22  ;;  %v368_v40 = vld [vmem:[#allocation7 + $0x958] sm:$0xff] }
 0x163   :  { %2902 = vmatpush2.bf16.msra.mxu0 %v3640_v54 }
 0x164   :  { %2903 = vmatprep.subr.bf16.mxu0 %v3633_v56 }
 0x165   :  { %2980 = vmatpush2.bf16.msra.mxu1 %v3402_v55  ;;  %v136_v55 = vld [vmem:[#allocation7 + $0x218] sm:$0xff] }
 0x166   :  { %2981 = vmatprep.subr.bf16.mxu1 %v3395_v61  ;;  %v3363_v3 = vcombine.high %v136_v55, %v140_v18  ;;  %v3362_v17 = vcombine.low %v136_v55, %v140_v18  ;;  %v352_v55 = vld [vmem:[#allocation7 + $0x8d8] sm:$0xff] }
 0x167   :  { %2904 = vmatpush2.bf16.msra.mxu0 %v3632_v6  ;;  %v244_v6 = vld [vmem:[#allocation7 + $0x578] sm:$0xff] }
 0x168   :  { %2905 = vmatprep.subr.bf16.mxu0 %v3625_v8  ;;  %v388_v8 = vld [vmem:[#allocation7 + $0x9f8] sm:$0xff]  ;;  %v3467_v20 = vcombine.high %v240_v4, %v244_v6 }
 0x169   :  { %2982 = vmatpush2.bf16.msra.mxu1 %v3394_v7  ;;  %v356_v18 = vld [vmem:[#allocation7 + $0x8f8] sm:$0xff] }
 0x16a   :  { %2983 = vmatprep.subr.bf16.mxu1 %v3387_v15  ;;  %v2583_v35 = vpop.f32.mrf.mxu0  ;;  %v200_v61 = vld [vmem:[#allocation7 + $0x418] sm:$0xff] }
 0x16b   :  { %v2584_v14 = vadd.f32 %v2583_v35, %v2543_v30  ;;  %2906 = vmatpush2.bf16.msra.mxu0 %v3624_v24  ;;  %v232_v24 = vld [vmem:[#allocation7 + $0x518] sm:$0xff] }
 0x16c   :  { %v2585_v45 = vpop.f32.mrf.mxu0  ;;  %2907 = vmatprep.subr.bf16.mxu0 %v3617_v28  ;;  %v380_v28 = vld [vmem:[#allocation7 + $0x9b8] sm:$0xff] }
 0x16d   :  { %2984 = vmatpush2.bf16.msra.mxu1 %v3386_v25  ;;  %v2625_v12 = vadd.f32 %v3866_v39, %v2584_v14  ;;  %v2586_v48 = vadd.f32 %v2585_v45, %v2545_v41  ;;  %v236_v25 = vld [vmem:[#allocation7 + $0x538] sm:$0xff]  ;;  %v3603_v35 = vcombine.high %v376_v26, %v380_v28 }
 0x16e   :  { %2985 = vmatprep.subr.bf16.mxu1 %v3379_v9  ;;  %v2587_v54 = vpop.f32.mrf.mxu0  ;;  %v3459_v32 = vcombine.high %v232_v24, %v236_v25  ;;  %v372_v41 = vld [vmem:[#allocation7 + $0x978] sm:$0xff]  ;;  %v3458_v14 = vcombine.low %v232_v24, %v236_v25 }
 0x16f   :  { %v3123_v56 = vmax.f32 %v2625_v12, 0.0  ;;  %v2627_v57 = vadd.f32 %v3868_v42, %v2586_v48  ;;  %2908 = vmatpush2.bf16.msra.mxu0 %v3616_v43  ;;  %v384_v42 = vld [vmem:[#allocation7 + $0x9d8] sm:$0xff]  ;;  %v3602_v43 = vcombine.low %v376_v26, %v380_v28  ;;  %v3595_v45 = vcombine.high %v368_v40, %v372_v41 }
 0x170   :  { %v2588_v39 = vpop.f32.mrf.mxu0  ;;  %3000 = vmatprep.subr.bf16.mxu0 %v3483_v47  ;;  %v3611_v23 = vcombine.high %v384_v42, %v388_v8  ;;  %v3610_v9 = vcombine.low %v384_v42, %v388_v8  ;;  %v220_v47 = vld [vmem:[#allocation7 + $0x4b8] sm:$0xff]  ;;  %v3594_v51 = vcombine.low %v368_v40, %v372_v41  ;;  %v3138_v42 = vadd.s32 256, %v3877_v5 }
 0x171   :  { %2986 = vmatpush2.bf16.msra.mxu1 %v3378_v46  ;;  %v3252_v0 = vmul.f32 2.0, %v3123_v56  ;;  %v3124_v1 = vmax.f32 %v2627_v57, 0.0  ;;  %v216_v46 = vld [vmem:[#allocation7 + $0x498] sm:$0xff] }
 0x172   :  { %2987 = vmatprep.subr.bf16.mxu1 %v3371_v50  ;;  %2910 = vmatmul.mubr.bf16.vlgmr.msra.gmra.mxu0 %v3843_v33  ;;  %v360_v12 = vld [vmem:[#allocation7 + $0x918] sm:$0xff]  ;;  %v3450_v50 = vcombine.low %v224_v36, %v228_v38  ;;  %v3442_v56 = vcombine.low %v216_v46, %v220_v47  ;;  %v3147_v25 = vadd.s32 %v3880_v10, %v3138_v42 }
 0x173   :  { %v3260_v11 = vsel %vm3905_vm1, %v3252_v0, 0.0  ;;  %v3253_v13 = vmul.f32 2.0, %v3124_v1  ;;  %3001 = vmatpush1.bf16.msra.mxu0 %v3482_v60  ;;  %3032 = vmatprep.mubr.bf16.mxu0 %v3824_v59  ;;  %v3466_v59 = vcombine.low %v240_v4, %v244_v6  ;;  %v364_v48 = vld [vmem:[#allocation7 + $0x938] sm:$0xff]  ;;  %v3579_v60 = vcombine.high %v352_v55, %v356_v18 }
 0x174   :  { %v3916_v15 = vpop.f32.mrf.mxu1  ;;  %3268 = vst [vmem:[#allocation10] sm:$0xff] %v3260_v11  ;;  %3002 = vmatprep.subr.bf16.mxu0 %v3475_v63  ;;  %v3587_v52 = vcombine.high %v360_v12, %v364_v48  ;;  %v212_v54 = vld [vmem:[#allocation7 + $0x478] sm:$0xff]  ;;  %v3586_v57 = vcombine.low %v360_v12, %v364_v48  ;;  %v3578_v1 = vcombine.low %v352_v55, %v356_v18 }
 0x175   :  { %2988 = vmatpush2.bf16.msra.mxu1 %v3370_v62  ;;  %v3261_v21 = vsel %vm3909_vm2, %v3253_v13, 0.0  ;;  %v204_v39 = vld [vmem:[#allocation7 + $0x438] sm:$0xff]  ;;  %v3434_v0 = vcombine.low %v208_v53, %v212_v54  ;;  %v3166_v38 = vadd.s32 %v3888_v29, %v3147_v25 }
 0x176   :  { %v3921_v22 = vpop.f32.mrf.mxu1  ;;  %2989 = vmatprep.subr.bf16.mxu1 %v3363_v3  ;;  %3269 = vst [vmem:[#allocation10 + $0x8] sm:$0xff] %v3261_v21  ;;  %v344_v62 = vld [vmem:[#allocation7 + $0x898] sm:$0xff]  ;;  %v3427_v3 = vcombine.high %v200_v61, %v204_v39  ;;  %v3426_v13 = vcombine.low %v200_v61, %v204_v39 }
 0x177   :  { %3003 = vmatpush1.bf16.msra.mxu0 %v3474_v58  ;;  %v348_v63 = vld [vmem:[#allocation7 + $0x8b8] sm:$0xff]  ;;  %v3139_v58 = vadd.s32 384, %v3877_v5  ;;  %v3174_v48 = vshrl.u32 %v3166_v38, 16 }
 0x178   :  { %v2669_v30 = vpop.f32.mrf.mxu1  ;;  %3004 = vmatprep.subr.bf16.mxu0 %v3467_v20  ;;  %v3571_v4 = vcombine.high %v344_v62, %v348_v63  ;;  %v320_v6 = vld [vmem:[#allocation7 + $0x7d8] sm:$0xff] }
 0x179   :  { %2990 = vmatpush2.bf16.msra.mxu1 %v3362_v17  ;;  %v324_v7 = vld [vmem:[#allocation7 + $0x7f8] sm:$0xff]  ;;  %v3570_v17 = vcombine.low %v344_v62, %v348_v63 }
 0x17a   :  { %v2670_v34 = vpop.f32.mrf.mxu1  ;;  %3041 = vmatprep.subr.bf16.mxu1 %v3611_v23  ;;  %v336_v8 = vld [vmem:[#allocation7 + $0x858] sm:$0xff]  ;;  %v3547_v20 = vcombine.high %v320_v6, %v324_v7  ;;  %v3546_v30 = vcombine.low %v320_v6, %v324_v7 }
 0x17b   :  { %3005 = vmatpush1.bf16.msra.mxu0 %v3466_v59  ;;  %v340_v11 = vld [vmem:[#allocation7 + $0x878] sm:$0xff]  ;;  %v3148_v59 = vadd.s32 %v3880_v10, %v3139_v58 }
 0x17c   :  { %2992 = vmatmul.mubr.bf16.vlgmr.msra.gmra.mxu1 %v3828_v16  ;;  %3006 = vmatprep.subr.bf16.mxu0 %v3459_v32  ;;  %v3443_v16 = vcombine.high %v216_v46, %v220_v47  ;;  %v3563_v21 = vcombine.high %v336_v8, %v340_v11  ;;  %v312_v23 = vld [vmem:[#allocation7 + $0x798] sm:$0xff] }
 0x17d   :  { %3042 = vmatpush1.bf16.msra.mxu1 %v3610_v9  ;;  %3073 = vmatprep.mubr.bf16.mxu1 %v3833_v27  ;;  %v3435_v27 = vcombine.high %v208_v53, %v212_v54  ;;  %v316_v24 = vld [vmem:[#allocation7 + $0x7b8] sm:$0xff]  ;;  %v3562_v9 = vcombine.low %v336_v8, %v340_v11 }
 0x17e   :  { %3043 = vmatprep.subr.bf16.mxu1 %v3603_v35  ;;  %v328_v26 = vld [vmem:[#allocation7 + $0x818] sm:$0xff]  ;;  %v3539_v32 = vcombine.high %v312_v23, %v316_v24 }
 0x17f   :  { %3007 = vmatpush1.bf16.msra.mxu0 %v3458_v14  ;;  %v332_v28 = vld [vmem:[#allocation7 + $0x838] sm:$0xff]  ;;  %v3538_v14 = vcombine.low %v312_v23, %v316_v24 }
 0x180   :  { %3008 = vmatprep.subr.bf16.mxu0 %v3451_v44  ;;  %v3555_v34 = vcombine.high %v328_v26, %v332_v28  ;;  %v304_v35 = vld [vmem:[#allocation7 + $0x758] sm:$0xff]  ;;  %v3554_v44 = vcombine.low %v328_v26, %v332_v28 }
 0x181   :  { %3044 = vmatpush1.bf16.msra.mxu1 %v3602_v43  ;;  %v308_v36 = vld [vmem:[#allocation7 + $0x778] sm:$0xff]  ;;  %v3167_v43 = vadd.s32 %v3888_v29, %v3148_v59 }
 0x182   :  { %3045 = vmatprep.subr.bf16.mxu1 %v3595_v45  ;;  %v448_v40 = vld [vmem:[#allocation7 + $0xbd8] sm:$0xff]  ;;  %v3531_v45 = vcombine.high %v304_v35, %v308_v36 }
 0x183   :  { %3009 = vmatpush1.bf16.msra.mxu0 %v3450_v50  ;;  %v452_v41 = vld [vmem:[#allocation7 + $0xbf8] sm:$0xff] }
 0x184   :  { %3010 = vmatprep.subr.bf16.mxu0 %v3443_v16  ;;  %v3675_v46 = vcombine.high %v448_v40, %v452_v41  ;;  %v296_v47 = vld [vmem:[#allocation7 + $0x718] sm:$0xff]  ;;  %v3530_v16 = vcombine.low %v304_v35, %v308_v36  ;;  %v3674_v53 = vcombine.low %v448_v40, %v452_v41  ;;  %v473_v41 = vsub.s32 2, %v3875_v2 }
 0x185   :  { %3046 = vmatpush1.bf16.msra.mxu1 %v3594_v51  ;;  %v300_v12 = vld [vmem:[#allocation7 + $0x738] sm:$0xff] }
 0x186   :  { %3047 = vmatprep.subr.bf16.mxu1 %v3587_v52  ;;  %v440_v50 = vld [vmem:[#allocation7 + $0xb98] sm:$0xff]  ;;  %v3175_v52 = vshrl.u32 %v3167_v43, 16  ;;  %v3523_v54 = vcombine.high %v296_v47, %v300_v12  ;;  %v3522_v61 = vcombine.low %v296_v47, %v300_v12  ;;  %v477_v12 = vsub.s32 3, %v3875_v2 }
 0x187   :  { %3011 = vmatpush1.bf16.msra.mxu0 %v3442_v56  ;;  %v444_v51 = vld [vmem:[#allocation7 + $0xbb8] sm:$0xff] }
 0x188   :  { %3012 = vmatprep.subr.bf16.mxu0 %v3435_v27  ;;  %v3667_v55 = vcombine.high %v440_v50, %v444_v51  ;;  %v288_v18 = vld [vmem:[#allocation7 + $0x6d8] sm:$0xff]  ;;  %v3183_v39 = vxor.u32 %v3175_v52, %v3167_v43  ;;  %v3666_v62 = vcombine.low %v440_v50, %v444_v51 }
 0x189   :  { %3048 = vmatpush1.bf16.msra.mxu1 %v3586_v57  ;;  %v292_v56 = vld [vmem:[#allocation7 + $0x6f8] sm:$0xff]  ;;  %v3182_v57 = vxor.u32 %v3174_v48, %v3166_v38 }
 0x18a   :  { %3049 = vmatprep.subr.bf16.mxu1 %v3579_v60  ;;  %v432_v27 = vld [vmem:[#allocation7 + $0xb58] sm:$0xff]  ;;  %v3515_v63 = vcombine.high %v288_v18, %v292_v56  ;;  %v3514_v42 = vcombine.low %v288_v18, %v292_v56  ;;  %v3191_v8 = vmul.u32 569420461, %v3183_v39 }
 0x18b   :  { %3013 = vmatpush1.bf16.msra.mxu0 %v3434_v0  ;;  %v436_v60 = vld [vmem:[#allocation7 + $0xb78] sm:$0xff] }
 0x18c   :  { %3014 = vmatprep.subr.bf16.mxu0 %v3427_v3  ;;  %v3659_v0 = vcombine.high %v432_v27, %v436_v60  ;;  %v284_v3 = vld [vmem:[#allocation7 + $0x6b8] sm:$0xff]  ;;  %v3658_v11 = vcombine.low %v432_v27, %v436_v60  ;;  %v3199_v26 = vshrl.u32 %v3191_v8, 15  ;;  %v478_v27 = vrot.slane %v3894_v49, %v477_v12 }
 0x18d   :  { %3050 = vmatpush1.bf16.msra.mxu1 %v3578_v1  ;;  %v280_v1 = vld [vmem:[#allocation7 + $0x698] sm:$0xff] }
 0x18e   :  { %3051 = vmatprep.subr.bf16.mxu1 %v3571_v4  ;;  %v3190_v4 = vmul.u32 569420461, %v3182_v57  ;;  %v424_v6 = vld [vmem:[#allocation7 + $0xb18] sm:$0xff]  ;;  %v3506_v25 = vcombine.low %v280_v1, %v284_v3  ;;  %v3207_v40 = vxor.u32 %v3199_v26, %v3191_v8 }
 0x18f   :  { %3015 = vmatpush1.bf16.msra.mxu0 %v3426_v13  ;;  %v428_v7 = vld [vmem:[#allocation7 + $0xb38] sm:$0xff]  ;;  %v3507_v13 = vcombine.high %v280_v1, %v284_v3 }
 0x190   :  { %3016 = vmatprep.subr.bf16.mxu0 %v3547_v20  ;;  %v3651_v58 = vcombine.high %v424_v6, %v428_v7  ;;  %v276_v20 = vld [vmem:[#allocation7 + $0x678] sm:$0xff]  ;;  %v3650_v28 = vcombine.low %v424_v6, %v428_v7  ;;  %v3215_v52 = vmul.u32 1935289751, %v3207_v40  ;;  %v2668_v7 = vadd.f32 %v3921_v22, %v478_v27 }
 0x191   :  { %3052 = vmatpush1.bf16.msra.mxu1 %v3570_v17  ;;  %v272_v17 = vld [vmem:[#allocation7 + $0x658] sm:$0xff] }
 0x192   :  { %3053 = vmatprep.subr.bf16.mxu1 %v3563_v21  ;;  %v3198_v21 = vshrl.u32 %v3190_v4, 15  ;;  %v416_v23 = vld [vmem:[#allocation7 + $0xad8] sm:$0xff]  ;;  %v3498_v38 = vcombine.low %v272_v17, %v276_v20 }
 0x193   :  { %3017 = vmatpush2.bf16.msra.mxu0 %v3546_v30  ;;  %v420_v24 = vld [vmem:[#allocation7 + $0xaf8] sm:$0xff]  ;;  %v3499_v30 = vcombine.high %v272_v17, %v276_v20 }
 0x194   :  { %3018 = vmatprep.subr.bf16.mxu0 %v3539_v32  ;;  %v3643_v59 = vcombine.high %v416_v23, %v420_v24  ;;  %v268_v32 = vld [vmem:[#allocation7 + $0x638] sm:$0xff] }
 0x195   :  { %3054 = vmatpush1.bf16.msra.mxu1 %v3562_v9  ;;  %v264_v9 = vld [vmem:[#allocation7 + $0x618] sm:$0xff] }
 0x196   :  { %3055 = vmatprep.subr.bf16.mxu1 %v3555_v34  ;;  %v3206_v34 = vxor.u32 %v3198_v21, %v3190_v4  ;;  %v408_v35 = vld [vmem:[#allocation7 + $0xa98] sm:$0xff]  ;;  %v3491_v43 = vcombine.high %v264_v9, %v268_v32 }
 0x197   :  { %3019 = vmatpush2.bf16.msra.mxu0 %v3538_v14  ;;  %v412_v36 = vld [vmem:[#allocation7 + $0xab8] sm:$0xff]  ;;  %v3642_v14 = vcombine.low %v416_v23, %v420_v24 }
 0x198   :  { %3020 = vmatprep.subr.bf16.mxu0 %v3531_v45  ;;  %v3214_v45 = vmul.u32 1935289751, %v3206_v34  ;;  %v460_v47 = vld [vmem:[#allocation7 + $0xc38] sm:$0xff] }
 0x199   :  { %3056 = vmatpush1.bf16.msra.mxu1 %v3554_v44  ;;  %v3635_v44 = vcombine.high %v408_v35, %v412_v36  ;;  %v400_v50 = vld [vmem:[#allocation7 + $0xa58] sm:$0xff] }
 0x19a   :  { %3057 = vmatprep.subr.bf16.mxu1 %v3675_v46  ;;  %v456_v46 = vld [vmem:[#allocation7 + $0xc18] sm:$0xff]  ;;  %v3222_v57 = vshrl.u32 %v3214_v45, 15 }
 0x19b   :  { %3021 = vmatpush2.bf16.msra.mxu0 %v3530_v16  ;;  %v404_v51 = vld [vmem:[#allocation7 + $0xa78] sm:$0xff]  ;;  %v3490_v16 = vcombine.low %v264_v9, %v268_v32  ;;  %v3683_v18 = vcombine.high %v456_v46, %v460_v47 }
 0x19c   :  { %3022 = vmatprep.subr.bf16.mxu0 %v3523_v54  ;;  %v3627_v56 = vcombine.high %v400_v50, %v404_v51  ;;  %v396_v39 = vld [vmem:[#allocation7 + $0xa38] sm:$0xff]  ;;  %v3626_v3 = vcombine.low %v400_v50, %v404_v51  ;;  %v3230_v4 = vxor.u32 %v3222_v57, %v3214_v45  ;;  %v3140_v50 = vadd.s32 512, %v3877_v5 }
 0x19d   :  { %3058 = vmatpush2.bf16.msra.mxu1 %v3674_v53  ;;  %v474_v53 = vrot.slane %v3894_v49, %v473_v41 }
 0x19e   :  { %3059 = vmatprep.subr.bf16.mxu1 %v3667_v55  ;;  %v3634_v55 = vcombine.low %v408_v35, %v412_v36  ;;  %v3238_v21 = vshrl.u32 %v3230_v4, 31  ;;  %v3149_v51 = vadd.s32 %v3880_v10, %v3140_v50 }
 0x19f   :  { %3023 = vmatpush2.bf16.msra.mxu0 %v3522_v61  ;;  %v392_v61 = vld [vmem:[#allocation7 + $0xa18] sm:$0xff] }
 0x1a0   :  { %3024 = vmatprep.subr.bf16.mxu0 %v3515_v63  ;;  %v3223_v63 = vshrl.u32 %v3215_v52, 15  ;;  %v3619_v6 = vcombine.high %v392_v61, %v396_v39  ;;  %v3618_v20 = vcombine.low %v392_v61, %v396_v39  ;;  %vm3246_vm3 = vcmp.eq.s32.totalorder %v3238_v21, 0 }
 0x1a1   :  { %3060 = vmatpush2.bf16.msra.mxu1 %v3666_v62  ;;  %v3682_v62 = vcombine.low %v456_v46, %v460_v47 }
 0x1a2   :  { %3061 = vmatprep.subr.bf16.mxu1 %v3659_v0  ;;  %v2666_v0 = vadd.f32 %v3916_v15, %v474_v53 }
 0x1a3   :  { %3025 = vmatpush2.bf16.msra.mxu0 %v3514_v42 }
 0x1a4   :  { %3026 = vmatprep.subr.bf16.mxu0 %v3507_v13  ;;  %v3231_v13 = vxor.u32 %v3223_v63, %v3215_v52  ;;  %v3168_v52 = vadd.s32 %v3888_v29, %v3149_v51 }
 0x1a5   :  { %3062 = vmatpush2.bf16.msra.mxu1 %v3658_v11 }
 0x1a6   :  { %3063 = vmatprep.subr.bf16.mxu1 %v3651_v58  ;;  %v3239_v26 = vshrl.u32 %v3231_v13, 31 }
 0x1a7   :  { %3027 = vmatpush2.bf16.msra.mxu0 %v3506_v25 }
 0x1a8   :  { %3028 = vmatprep.subr.bf16.mxu0 %v3499_v30  ;;  %vm3247_vm4 = vcmp.eq.s32.totalorder %v3239_v26, 0 }
 0x1a9   :  { %3064 = vmatpush2.bf16.msra.mxu1 %v3650_v28 }
 0x1aa   :  { %3065 = vmatprep.subr.bf16.mxu1 %v3643_v59  ;;  %v2706_v48 = vpop.f32.mrf.mxu0 }
 0x1ab   :  { %3029 = vmatpush2.bf16.msra.mxu0 %v3498_v38  ;;  %v2707_v42 = vadd.f32 %v2706_v48, %v2666_v0  ;;  %v485_v0 = vsub.s32 5, %v3875_v2 }
 0x1ac   :  { %v2708_v54 = vpop.f32.mrf.mxu0  ;;  %3030 = vmatprep.subr.bf16.mxu0 %v3491_v43 }
 0x1ad   :  { %3066 = vmatpush2.bf16.msra.mxu1 %v3642_v14  ;;  %v2709_v58 = vadd.f32 %v2708_v54, %v2668_v7  ;;  %v3176_v54 = vshrl.u32 %v3168_v52, 16 }
 0x1ae   :  { %3067 = vmatprep.subr.bf16.mxu1 %v3635_v44  ;;  %v2710_v60 = vpop.f32.mrf.mxu0 }
 0x1af   :  { %3031 = vmatpush2.bf16.msra.mxu0 %v3490_v16 }
 0x1b0   :  { %v2711_v1 = vpop.f32.mrf.mxu0  ;;  %3096 = vmatprep.subr.bf16.mxu0 %v3683_v18  ;;  %v3184_v18 = vxor.u32 %v3176_v54, %v3168_v52 }
 0x1b1   :  { %3068 = vmatpush2.bf16.msra.mxu1 %v3634_v55 }
 0x1b2   :  { %3069 = vmatprep.subr.bf16.mxu1 %v3627_v56  ;;  %3033 = vmatmul.mubr.bf16.vlgmr.msra.gmra.mxu0 %v3830_v19  ;;  %v2788_v8 = vpop.f32.mrf.mxu0  ;;  %v3192_v57 = vmul.u32 569420461, %v3184_v18  ;;  %v493_v18 = vsub.s32 7, %v3875_v2 }
 0x1b3   :  { %3097 = vmatpush1.bf16.msra.mxu0 %v3682_v62  ;;  %3114 = vmatprep.mubr.bf16.mxu0 %v3786_v31  ;;  %v481_v62 = vsub.s32 4, %v3875_v2 }
 0x1b4   :  { %v2747_v11 = vpop.f32.mrf.mxu1  ;;  %v2790_v17 = vpop.f32.mrf.mxu0  ;;  %v3200_v60 = vshrl.u32 %v3192_v57, 15 }
 0x1b5   :  { %v2748_v15 = vadd.f32 %v2747_v11, %v2707_v42  ;;  %3070 = vmatpush2.bf16.msra.mxu1 %v3626_v3  ;;  %v482_v3 = vrot.slane %v3894_v49, %v481_v62 }
 0x1b6   :  { %v2749_v23 = vpop.f32.mrf.mxu1  ;;  %3071 = vmatprep.subr.bf16.mxu1 %v3619_v6  ;;  %v2792_v22 = vpop.f32.mrf.mxu0  ;;  %v3208_v39 = vxor.u32 %v3200_v60, %v3192_v57  ;;  %v486_v6 = vrot.slane %v3894_v49, %v485_v0  ;;  %v494_v60 = vrot.slane %v3894_v49, %v493_v18 }
 0x1b7   :  { %v2789_v24 = vadd.f32 %v2788_v8, %v2748_v15  ;;  %v2750_v25 = vadd.f32 %v2749_v23, %v2709_v58 }
 0x1b8   :  { %v2751_v28 = vpop.f32.mrf.mxu1  ;;  %v2793_v59 = vpop.f32.mrf.mxu0  ;;  %v3216_v1 = vmul.u32 1935289751, %v3208_v39 }
 0x1b9   :  { %v3125_v19 = vmax.f32 %v2789_v24, 0.0  ;;  %v2791_v30 = vadd.f32 %v2790_v17, %v2750_v25  ;;  %3072 = vmatpush2.bf16.msra.mxu1 %v3618_v20 }
 0x1ba   :  { %v2752_v9 = vpop.f32.mrf.mxu1  ;;  %3687 = vmatmul.mubr.msk.bf16.vlgmr.msra.gmra.mxu0 %vm2463_vm0, %v3838_v37  ;;  %v3224_v7 = vshrl.u32 %v3216_v1, 15 }
 0x1bb   :  { %v3254_v31 = vmul.f32 2.0, %v3125_v19  ;;  %v3126_v32 = vmax.f32 %v2791_v30, 0.0 }
 0x1bc   :  { %3074 = vmatmul.mubr.bf16.vlgmr.msra.gmra.mxu1 %v3843_v33  ;;  %v3141_v33 = vadd.s32 640, %v3877_v5  ;;  %v3232_v13 = vxor.u32 %v3224_v7, %v3216_v1 }
 0x1bd   :  { %v3262_v34 = vsel %vm3246_vm3, %v3254_v31, 0.0  ;;  %v3255_v35 = vmul.f32 2.0, %v3126_v32 }
 0x1be   :  { %3270 = vst [vmem:[#allocation10 + $0x10] sm:$0xff] %v3262_v34  ;;  %v3150_v16 = vadd.s32 %v3880_v10, %v3141_v33  ;;  %v3240_v23 = vshrl.u32 %v3232_v13, 31 }
 0x1bf   :  { %v3263_v36 = vsel %vm3247_vm4, %v3255_v35, 0.0 }
 0x1c0   :  { %3271 = vst [vmem:[#allocation10 + $0x18] sm:$0xff] %v3263_v36  ;;  %v3169_v53 = vadd.s32 %v3888_v29, %v3150_v16  ;;  %vm3248_vm5 = vcmp.eq.s32.totalorder %v3240_v23, 0 }
 0x1c2   :  { %v3177_v55 = vshrl.u32 %v3169_v53, 16 }
 0x1c4   :  { %v3185_v56 = vxor.u32 %v3177_v55, %v3169_v53 }
 0x1c6   :  { %v3193_v27 = vmul.u32 569420461, %v3185_v56 }
 0x1c8   :  { %v3201_v61 = vshrl.u32 %v3193_v27, 15 }
 0x1ca   :  { %v3209_v63 = vxor.u32 %v3201_v61, %v3193_v27 }
 0x1cc   :  { %v3217_v4 = vmul.u32 1935289751, %v3209_v63 }
 0x1ce   :  { %v3225_v8 = vshrl.u32 %v3217_v4, 15 }
 0x1d0   :  { %v3233_v17 = vxor.u32 %v3225_v8, %v3217_v4 }
 0x1d2   :  { %v3241_v26 = vshrl.u32 %v3233_v17, 31 }
 0x1d4   :  { %vm3249_vm6 = vcmp.eq.s32.totalorder %v3241_v26, 0 }
 0x1f2   :  { %v2829_v38 = vpop.f32.mrf.mxu0 }
 0x1f3   :  { %v2830_v42 = vadd.f32 %v2829_v38, %v482_v3 }
 0x1f4   :  { %v2870_v40 = vpop.f32.mrf.mxu1  ;;  %v2831_v41 = vpop.f32.mrf.mxu0 }
 0x1f5   :  { %v2832_v11 = vadd.f32 %v2831_v41, %v486_v6  ;;  %v2871_v58 = vadd.f32 %v2870_v40, %v2830_v42 }
 0x1f6   :  { %v2872_v14 = vpop.f32.mrf.mxu1  ;;  %v2833_v43 = vpop.f32.mrf.mxu0 }
 0x1f7   :  { %v2873_v20 = vadd.f32 %v2872_v14, %v2832_v11  ;;  %v3142_v14 = vadd.s32 768, %v3877_v5  ;;  %v3143_v43 = vadd.s32 896, %v3877_v5  ;;  %v489_v5 = vsub.s32 6, %v3875_v2 }
 0x1f8   :  { %v2874_v44 = vpop.f32.mrf.mxu1  ;;  %v2834_v45 = vpop.f32.mrf.mxu0 }
 0x1f9   :  { %v3151_v44 = vadd.s32 %v3880_v10, %v3142_v14  ;;  %v3152_v45 = vadd.s32 %v3880_v10, %v3143_v43  ;;  %v490_v57 = vrot.slane %v3894_v49, %v489_v5 }
 0x1fa   :  { %v2875_v46 = vpop.f32.mrf.mxu1 }
 0x1fb   :  { %v3170_v46 = vadd.s32 %v3888_v29, %v3151_v44 }
 0x1fc   :  { %v2952_v47 = vpop.f32.mrf.mxu1 }
 0x1fe   :  { %v2954_v12 = vpop.f32.mrf.mxu1 }
 0x200   :  { %v2956_v48 = vpop.f32.mrf.mxu1 }
 0x202   :  { %v2957_v37 = vpop.f32.mrf.mxu1 }
 0x232   :  { %v2911_v15 = vpop.f32.mrf.mxu0 }
 0x233   :  { %v2912_v21 = vadd.f32 %v2911_v15, %v2871_v58 }
 0x234   :  { %v2913_v24 = vpop.f32.mrf.mxu0 }
 0x235   :  { %v2953_v25 = vadd.f32 %v2952_v47, %v2912_v21  ;;  %v2914_v22 = vadd.f32 %v2913_v24, %v2873_v20  ;;  %v3171_v47 = vadd.s32 %v3888_v29, %v3152_v45 }
 0x236   :  { %v2915_v28 = vpop.f32.mrf.mxu0 }
 0x237   :  { %v3127_v19 = vmax.f32 %v2953_v25, 0.0  ;;  %v2955_v30 = vadd.f32 %v2954_v12, %v2914_v22  ;;  %v3178_v12 = vshrl.u32 %v3170_v46, 16  ;;  %v3179_v48 = vshrl.u32 %v3171_v47, 16 }
 0x238   :  { %v2916_v59 = vpop.f32.mrf.mxu0 }
 0x239   :  { %v3256_v9 = vmul.f32 2.0, %v3127_v19  ;;  %v3128_v31 = vmax.f32 %v2955_v30, 0.0  ;;  %v3186_v37 = vxor.u32 %v3178_v12, %v3170_v46  ;;  %v3187_v50 = vxor.u32 %v3179_v48, %v3171_v47 }
 0x23b   :  { %v3264_v32 = vsel %vm3248_vm5, %v3256_v9, 0.0  ;;  %v3257_v34 = vmul.f32 2.0, %v3128_v31  ;;  %v3194_v33 = vmul.u32 569420461, %v3186_v37  ;;  %v3195_v51 = vmul.u32 569420461, %v3187_v50 }
 0x23c   :  { %v2993_v35 = vpop.f32.mrf.mxu1  ;;  %3272 = vst [vmem:[#allocation10 + $0x20] sm:$0xff] %v3264_v32 }
 0x23d   :  { %v3265_v36 = vsel %vm3249_vm6, %v3257_v34, 0.0  ;;  %v3202_v16 = vshrl.u32 %v3194_v33, 15  ;;  %v3203_v52 = vshrl.u32 %v3195_v51, 15  ;;  %v2994_v62 = vadd.f32 %v2993_v35, %v490_v57 }
 0x23e   :  { %v2995_v38 = vpop.f32.mrf.mxu1  ;;  %3273 = vst [vmem:[#allocation10 + $0x28] sm:$0xff] %v3265_v36 }
 0x23f   :  { %v3210_v53 = vxor.u32 %v3202_v16, %v3194_v33  ;;  %v3211_v54 = vxor.u32 %v3203_v52, %v3195_v51  ;;  %v2996_v1 = vadd.f32 %v2995_v38, %v494_v60 }
 0x240   :  { %v2997_v40 = vpop.f32.mrf.mxu1 }
 0x241   :  { %v3218_v55 = vmul.u32 1935289751, %v3210_v53  ;;  %v3219_v56 = vmul.u32 1935289751, %v3211_v54 }
 0x242   :  { %v2998_v41 = vpop.f32.mrf.mxu1 }
 0x243   :  { %v3226_v27 = vshrl.u32 %v3218_v55, 15  ;;  %v3227_v39 = vshrl.u32 %v3219_v56, 15 }
 0x245   :  { %v3234_v0 = vxor.u32 %v3226_v27, %v3218_v55  ;;  %v3235_v7 = vxor.u32 %v3227_v39, %v3219_v56 }
 0x247   :  { %v3242_v11 = vshrl.u32 %v3234_v0, 31  ;;  %v3243_v20 = vshrl.u32 %v3235_v7, 31 }
 0x249   :  { %vm3250_vm7 = vcmp.eq.s32.totalorder %v3242_v11, 0  ;;  %vm3251_vm8 = vcmp.eq.s32.totalorder %v3243_v20, 0 }
 0x272   :  { %v3034_v10 = vpop.f32.mrf.mxu0 }
 0x273   :  { %v3035_v3 = vadd.f32 %v3034_v10, %v2994_v62 }
 0x274   :  { %v3036_v29 = vpop.f32.mrf.mxu0 }
 0x275   :  { %v3037_v42 = vadd.f32 %v3036_v29, %v2996_v1 }
 0x276   :  { %v3038_v61 = vpop.f32.mrf.mxu0 }
 0x278   :  { %v3039_v63 = vpop.f32.mrf.mxu0 }
 0x27a   :  { %v3116_v4 = vpop.f32.mrf.mxu0 }
 0x27c   :  { %v3075_v6 = vpop.f32.mrf.mxu1  ;;  %v3118_v8 = vpop.f32.mrf.mxu0 }
 0x27d   :  { %v3076_v2 = vadd.f32 %v3075_v6, %v3035_v3 }
 0x27e   :  { %v3077_v13 = vpop.f32.mrf.mxu1  ;;  %v3120_v17 = vpop.f32.mrf.mxu0 }
 0x27f   :  { %v3117_v58 = vadd.f32 %v3116_v4, %v3076_v2  ;;  %v3078_v15 = vadd.f32 %v3077_v13, %v3037_v42 }
 0x280   :  { %v3079_v49 = vpop.f32.mrf.mxu1  ;;  %v3121_v24 = vpop.f32.mrf.mxu0 }
 0x281   :  { %v3129_v21 = vmax.f32 %v3117_v58, 0.0  ;;  %v3119_v23 = vadd.f32 %v3118_v8, %v3078_v15 }
 0x282   :  { %v3080_v25 = vpop.f32.mrf.mxu1 }
 0x283   :  { %v3258_v22 = vmul.f32 2.0, %v3129_v21  ;;  %v3130_v26 = vmax.f32 %v3119_v23, 0.0 }
 0x285   :  { %v3266_v28 = vsel %vm3250_vm7, %v3258_v22, 0.0  ;;  %v3259_v19 = vmul.f32 2.0, %v3130_v26 }
 0x286   :  { %3274 = vst [vmem:[#allocation10 + $0x30] sm:$0xff] %v3266_v28 }
 0x287   :  { %v3267_v30 = vsel %vm3251_vm8, %v3259_v19, 0.0 }
 0x288   :  { %3275 = vst [vmem:[#allocation10 + $0x38] sm:$0xff] %v3267_v30 }
 0x289   :  { %3766 = shalt.err (!%p3763_p5)
}
 0x28a   :  { %3285 = dma.vmem_to_hbm [thread:$0]  %s3283_s6, 1024, %s3969_s4, [#allocation6]  }
 0x28b   :  { %3779 = dma.done.wait [#allocation6], 1024  }
 0x28c   :  { %3780 = vsyncadd [#allocation6], 4294966272 }
 0x28d   :  { %3289 = vsyncpa [#allocation5], 1 }
 0x28e   :  { %3290 = vsyncpa [#allocation8], 1 }
 0x28f   :  { %3291 = vsyncpa [#allocation6], 1 }

</bundles_post_ra>
